<compile_context>
chip_gen: v5e
topology: v5e:2x2
jax: 0.10.0
libtpu: 0.0.40
codegen_flags: <defaults>
</compile_context>

<pallas_src>
from itertools import chain, combinations

import jax
import jax.numpy as jnp
from jax.experimental import pallas as pl
from jax.experimental.pallas import tpu as pltpu


def powerset(rels):
    arange = range(1, len(rels) + 1)
    return list(chain.from_iterable(combinations(rels, i) for i in arange))


def _vmem_capacity_bytes():
    """Physical VMEM of the local chip (fallback 64 MiB == v7x, the smallest)."""
    try:
        cap = getattr(pltpu.get_tpu_info(), "vmem_capacity_bytes", None)
        if cap:
            return int(cap)
    except Exception:
        pass
    return 64 * 1024 * 1024


# ----------------------------------------------------------------------------
# Kernel: hops 1..H of multi-hop neighbor averaging, one relation subset per
# outermost grid index.
# grid = (S, H, MT, KT)
#   j (subset)   : "parallel" -- independent work, shardable across TensorCores
#   h (hop)      : carries previous-hop features in a bf16 VMEM scratch,
#                  double-buffered by hop parity
#   m (row tile) : output row tile of the matmul
#   k (red tile) : reduction axis; a (tile, F) f32 accumulator is zeroed at
#                  k==0 and emitted at k==KT-1
# ----------------------------------------------------------------------------
def _make_nars_kernel(n_pad, tile, kt, a_resident):
    last_k = kt - 1

    def kernel(x_ref, a_ref, out_ref, carry_ref, acc_ref):
        h = pl.program_id(1)
        m = pl.program_id(2)
        k = pl.program_id(3)

        # A tile: sliced out of the VMEM-resident (N, N) operator, or the
        # streamed (tile, tile) block itself.
        if a_resident:
            moff = pl.multiple_of(m * tile, tile)
            koff = pl.multiple_of(k * tile, tile)
            a_tile = a_ref[0, pl.ds(moff, tile), pl.ds(koff, tile)]
        else:
            a_tile = a_ref[0]

        @pl.when(k == 0)
        def _zero_acc():
            acc_ref[...] = jnp.zeros_like(acc_ref)

        # Hop 1: RHS is the raw (bf16) feature tile.
        @pl.when(h == 0)
        def _first_hop():
            acc_ref[...] += jnp.dot(a_tile, x_ref[...],
                                    preferred_element_type=jnp.float32)

        # Hops >= 2: RHS is the previous hop's bf16 carry (slot (h-1) % 2).
        @pl.when(h > 0)
        def _later_hops():
            roff = pl.multiple_of(((h + 1) & 1) * n_pad + k * tile, tile)
            acc_ref[...] += jnp.dot(a_tile, carry_ref[pl.ds(roff, tile), :],
                                    preferred_element_type=jnp.float32)

        # Last reduction step: emit the hop result and stash the bf16 carry.
        @pl.when(k == last_k)
        def _finalize():
            result = acc_ref[...]
            out_ref[0, 0] = result
            woff = pl.multiple_of((h & 1) * n_pad + m * tile, tile)
            carry_ref[pl.ds(woff, tile), :] = result.astype(jnp.bfloat16)

    return kernel


def nars_forward(x, adj_norm, weight, num_hops, *, tile=512):
    """NARS forward (single node type).

    Args:
      x:        [N, F] float32 node features.
      adj_norm: [S, N, N] degree-normalized operators diag(1/deg) @ (A + A^T).
      weight:   [num_hops + 1, S, 1, F] float32 aggregation weights.
      num_hops: number of propagation hops H.
      tile:     m/k matmul tile (multiple of 128; clamped to padded N).

    Returns:
      out: [H+1, S, N, F] float32  (module forward output)
      agg: [H+1, N, F]    float32  (module.weighted_aggregation(out))
    """
    n, f = x.shape
    s = adj_norm.shape[0]
    weight = weight.astype(jnp.float32)

    # Hop 0 is the identity; compute it (and let it feed the aggregation) in XLA.
    out0 = jnp.broadcast_to(x.astype(jnp.float32)[None, None], (1, s, n, f))
    if num_hops == 0:
        return out0, (out0 * weight).sum(axis=1)

    f_pad = -(-f // 128) * 128                 # lane-dense feature axis
    n_ceil = -(-n // 128) * 128
    tile = max(128, (min(tile, n_ceil) // 128) * 128)
    n_pad = -(-n // tile) * tile
    mt = kt = n_pad // tile

    x_p = jnp.zeros((n_pad, f_pad), jnp.bfloat16).at[:n, :f].set(
        x.astype(jnp.bfloat16))
    a_p = jnp.zeros((s, n_pad, n_pad), jnp.bfloat16).at[:, :n, :n].set(
        adj_norm.astype(jnp.bfloat16))

    # --- VMEM budget & A residency -------------------------------------------
    budget = min(int(_vmem_capacity_bytes() * 3 // 4), 100 * 1024 * 1024)
    carry_bytes = 2 * n_pad * f_pad * 2                      # bf16 carry, 2 slots
    acc_bytes = tile * f_pad * 4                             # f32 accumulator
    io_bytes = 2 * tile * f_pad * 2 + 2 * tile * f_pad * 4   # x / out (dbl-buf)
    a_res_bytes = 2 * n_pad * n_pad * 2                      # resident A (dbl-buf)
    a_str_bytes = 2 * tile * tile * 2                        # streamed A tile
    fixed = carry_bytes + acc_bytes + io_bytes
    a_resident = fixed + a_res_bytes <= budget
    needed = fixed + (a_res_bytes if a_resident else a_str_bytes)
    vmem_limit = int(max(32 * 1024 * 1024, min(needed + (8 << 20), budget)))

    if a_resident:
        a_spec = pl.BlockSpec((1, n_pad, n_pad), lambda j, h, m, k: (j, 0, 0))
    else:
        a_spec = pl.BlockSpec((1, tile, tile), lambda j, h, m, k: (j, m, k))

    kernel = _make_nars_kernel(n_pad, tile, kt, a_resident)

    out_hops = pl.pallas_call(
        kernel,
        out_shape=jax.ShapeDtypeStruct((num_hops, s, n_pad, f_pad), jnp.float32),
        grid_spec=pltpu.PrefetchScalarGridSpec(
            num_scalar_prefetch=0,
            grid=(s, num_hops, mt, kt),
            in_specs=[
                # x is only consumed at the first hop; park the index afterwards
                # so it is not re-streamed.
                pl.BlockSpec((tile, f_pad),
                             lambda j, h, m, k: (jnp.where(h == 0, k, 0), 0)),
                a_spec,
            ],
            out_specs=pl.BlockSpec((1, 1, tile, f_pad),
                                   lambda j, h, m, k: (h, j, m, 0)),
            scratch_shapes=[
                pltpu.VMEM((2 * n_pad, f_pad), jnp.bfloat16),  # hop carry
                pltpu.VMEM((tile, f_pad), jnp.float32),        # matmul acc
            ],
        ),
        compiler_params=pltpu.CompilerParams(
            # j is independent across subsets (carry/acc scratch are per-core),
            # so it can be sharded across TensorCores; h/m/k carry state.
            dimension_semantics=("parallel", "arbitrary", "arbitrary",
                                 "arbitrary"),
            vmem_limit_bytes=vmem_limit,
        ),
    )(x_p, a_p)

    out = jnp.concatenate([out0, out_hops[:, :, :n, :f]], axis=0)
    agg = (out * weight).sum(axis=1)            # == weighted_aggregation(out)
    return out, agg


# ----------------------------------------------------------------------------
# Host-side glue reproducing the NARS forward semantics for a single node type.
# ----------------------------------------------------------------------------
def build_subset_operators(adj_list, subsets):
    """adj_list[r][dst, src] = multiplicity of edge src->dst for relation r.

    Returns adj_norm: [S, N, N] float32, the degree-normalized symmetric
    operator diag(1/deg_subset) @ (sum_r A_r + A_r^T), with 0 rows for isolated
    nodes (matches the module's `norm[isinf] = 0`).  The normalization is
    folded into the adjacency so the kernel is a pure matmul.
    """
    n = adj_list[0].shape[0]
    ops = []
    for subset in subsets:
        a = jnp.zeros((n, n), jnp.float32)
        deg = jnp.zeros((n,), jnp.float32)
        for r in subset:
            a = a + adj_list[r] + adj_list[r].T
            deg = deg + adj_list[r].sum(axis=1) + adj_list[r].sum(axis=0)
        norm = jnp.where(deg > 0, 1.0 / deg, 0.0)
        ops.append(norm[:, None] * a)
    return jnp.stack(ops)


def nars_reference(x, adj_norm, num_hops):
    """Pure-JAX float32 reference with the PyTorch loop semantics."""
    s, n, _ = adj_norm.shape
    f = x.shape[1]
    cur = jnp.broadcast_to(x[None].astype(jnp.float32), (s, n, f))
    outs = [cur]
    for _ in range(num_hops):
        cur = jnp.einsum('snk,skf->snf', adj_norm, cur,
                         precision=jax.lax.Precision.HIGHEST)
        outs.append(cur)
    return jnp.stack(outs)                     # [H+1, S, N, F]


def nars_reference_matched(x, adj_norm, num_hops):
    """Reference that mimics the kernel's bf16 rounding of A and the matmul RHS."""
    a = adj_norm.astype(jnp.bfloat16).astype(jnp.float32)
    s, n, _ = adj_norm.shape
    f = x.shape[1]
    cur = jnp.broadcast_to(x[None].astype(jnp.float32), (s, n, f))
    outs = [cur]
    for _ in range(num_hops):
        rhs = cur.astype(jnp.bfloat16).astype(jnp.float32)
        cur = jnp.einsum('snk,skf->snf', a, rhs,
                         precision=jax.lax.Precision.HIGHEST)
        outs.append(cur)
    return jnp.stack(outs)


if __name__ == "__main__":
    key = jax.random.PRNGKey(0)

    # Deliberately not tile-aligned: the wrapper pads N 200 -> 256, F 96 -> 128.
    n, f = 200, 96
    num_hops = 3
    num_relations = 3
    num_sampled_subsets = 4
    num_edges = 600

    k_x, k_w, *k_edges = jax.random.split(key, 2 + 2 * num_relations)

    # Node features for the single node type ('paper').
    x = jax.random.normal(k_x, (n, f), dtype=jnp.float32)

    # Random edge_index per relation; dense adjacency A[dst, src] += 1
    # (matches SparseTensor(row=col, col=row) used in the module).
    adj_list = []
    for r in range(num_relations):
        row = jax.random.randint(k_edges[2 * r], (num_edges,), 0, n)
        col = jax.random.randint(k_edges[2 * r + 1], (num_edges,), 0, n)
        a = jnp.zeros((n, n), jnp.float32).at[col, row].add(1.0)
        adj_list.append(a)

    # Deterministic relation subsets (module allows passing subsets explicitly).
    subsets = powerset(list(range(num_relations)))[:num_sampled_subsets]
    s = len(subsets)

    # Xavier-uniform weight of shape (num_hops+1, num_sampled_subsets, 1, F).
    fan_in = s * 1 * f
    fan_out = (num_hops + 1) * 1 * f
    bound = (6.0 / (fan_in + fan_out)) ** 0.5
    weight = jax.random.uniform(
        k_w, (num_hops + 1, s, 1, f), jnp.float32, minval=-bound, maxval=bound)

    adj_norm = build_subset_operators(adj_list, subsets)

    # --- kernel forward: multi-hop neighbor averaging (+ XLA aggregation) ----
    out, agg = nars_forward(x, adj_norm, weight, num_hops, tile=512)
    out = jax.block_until_ready(out)
    agg = jax.block_until_ready(agg)

    assert out.shape == (num_hops + 1, s, n, f)
    assert agg.shape == (num_hops + 1, n, f)

    # Hop 0 is the exact input features.
    assert jnp.array_equal(out[0], jnp.broadcast_to(x[None], (s, n, f)))

    # Check against a reference with the same bf16 rounding as the kernel.
    out_m = nars_reference_matched(x, adj_norm, num_hops)
    agg_m = (out_m * weight).sum(axis=1)
    assert jnp.allclose(out, out_m, atol=1e-2, rtol=1e-2), \
        float(jnp.max(jnp.abs(out - out_m)))
    assert jnp.allclose(agg, agg_m, atol=1e-2, rtol=1e-2), \
        float(jnp.max(jnp.abs(agg - agg_m)))

    # Semantic check against the full-f32 PyTorch-equivalent loop
    # (looser tolerance: the kernel uses a bf16 adjacency/carry by design).
    out_f32 = nars_reference(x, adj_norm, num_hops)
    agg_f32 = (out_f32 * weight).sum(axis=1)
    assert jnp.allclose(out, out_f32, atol=5e-2, rtol=5e-2)
    assert jnp.allclose(agg, agg_f32, atol=5e-2, rtol=5e-2)

    print("KERNEL_OK")
</pallas_src>

<mosaic_0001>
module attributes {stable_mosaic.version = 11 : i64} {
  func.func @kernel(%arg0: i32, %arg1: i32, %arg2: i32, %arg3: i32, %arg4: memref<256x128xbf16, #tpu.memory_space<vmem>>, %arg5: memref<1x256x256xbf16, #tpu.memory_space<vmem>>, %arg6: memref<1x1x256x128xf32, #tpu.memory_space<vmem>>, %arg7: memref<512x128xbf16, #tpu.memory_space<vmem>>, %arg8: memref<256x128xf32, #tpu.memory_space<vmem>>) attributes {dimension_semantics = [#tpu.dimension_semantics<parallel>, #tpu.dimension_semantics<arbitrary>, #tpu.dimension_semantics<arbitrary>, #tpu.dimension_semantics<arbitrary>], iteration_bounds = array<i64: 4, 3, 1, 1>, scalar_prefetch = 0 : i64, scratch_operands = 2 : i64, tpu.core_type = #tpu.core_type<tc>, window_params = [{transform_indices = @transform_0, window_bounds = array<i64: 256, 128>}, {transform_indices = @transform_1, window_bounds = array<i64: 1, 256, 256>}, {transform_indices = @transform_2, window_bounds = array<i64: 1, 1, 256, 128>}]} {
    %c256_i32 = arith.constant 256 : i32
    %0 = arith.muli %arg2, %c256_i32 : i32
    %1 = tpu.assume_multiple %0, 256 : i32
    %c256_i32_0 = arith.constant 256 : i32
    %2 = arith.muli %arg3, %c256_i32_0 : i32
    %3 = tpu.assume_multiple %2, 256 : i32
    %c0 = arith.constant 0 : index
    %4 = arith.index_cast %1 : i32 to index
    %5 = arith.index_cast %3 : i32 to index
    %6 = vector.load %arg5[%c0, %4, %5] : memref<1x256x256xbf16, #tpu.memory_space<vmem>>, vector<1x256x256xbf16>
    %7 = vector.shape_cast %6 : vector<1x256x256xbf16> to vector<256x256xbf16>
    %c0_i32 = arith.constant 0 : i32
    %8 = arith.cmpi eq, %arg3, %c0_i32 : i32
    %9 = arith.extui %8 : i1 to i32
    %c0_i32_1 = arith.constant 0 : i32
    %10 = arith.cmpi ne, %9, %c0_i32_1 : i32
    scf.if %10 {
      %cst = arith.constant 0.000000e+00 : f32
      %20 = vector.broadcast %cst : f32 to vector<256x128xf32>
      %c0_8 = arith.constant 0 : index
      %c0_9 = arith.constant 0 : index
      %21 = vector.load %arg8[%c0_8, %c0_9] : memref<256x128xf32, #tpu.memory_space<vmem>>, vector<256x128xf32>
      tpu.vector_store %arg8[%c0_8, %c0_9], %20 {strides = array<i32>} : memref<256x128xf32, #tpu.memory_space<vmem>>, vector<256x128xf32>,
    } else {
    }
    %c0_i32_2 = arith.constant 0 : i32
    %11 = arith.cmpi eq, %arg1, %c0_i32_2 : i32
    %12 = arith.extui %11 : i1 to i32
    %c0_i32_3 = arith.constant 0 : i32
    %13 = arith.cmpi ne, %12, %c0_i32_3 : i32
    scf.if %13 {
      %c0_8 = arith.constant 0 : index
      %c0_9 = arith.constant 0 : index
      %20 = vector.load %arg8[%c0_8, %c0_9] : memref<256x128xf32, #tpu.memory_space<vmem>>, vector<256x128xf32>
      %c0_10 = arith.constant 0 : index
      %c0_11 = arith.constant 0 : index
      %21 = vector.load %arg4[%c0_10, %c0_11] : memref<256x128xbf16, #tpu.memory_space<vmem>>, vector<256x128xbf16>
      %cst = arith.constant dense<0.000000e+00> : vector<256x128xf32>
      %22 = tpu.matmul %7, %21, %cst {dimension_numbers = #tpu.dot_dimension_numbers<[1], [0], [0], [1], [0, 0, 1, 1], [], []>} : vector<256x256xbf16>, vector<256x128xbf16>, vector<256x128xf32> -> vector<256x128xf32>
      %23 = arith.addf %20, %22 : vector<256x128xf32>
      %c0_12 = arith.constant 0 : index
      %c0_13 = arith.constant 0 : index
      %24 = vector.load %arg8[%c0_12, %c0_13] : memref<256x128xf32, #tpu.memory_space<vmem>>, vector<256x128xf32>
      tpu.vector_store %arg8[%c0_12, %c0_13], %23 {strides = array<i32>} : memref<256x128xf32, #tpu.memory_space<vmem>>, vector<256x128xf32>,
    } else {
    }
    %c0_i32_4 = arith.constant 0 : i32
    %14 = arith.cmpi sgt, %arg1, %c0_i32_4 : i32
    %15 = arith.extui %14 : i1 to i32
    %c0_i32_5 = arith.constant 0 : i32
    %16 = arith.cmpi ne, %15, %c0_i32_5 : i32
    scf.if %16 {
      %c1_i32 = arith.constant 1 : i32
      %20 = arith.addi %arg1, %c1_i32 : i32
      %c1_i32_8 = arith.constant 1 : i32
      %21 = arith.andi %20, %c1_i32_8 : i32
      %c256_i32_9 = arith.constant 256 : i32
      %22 = arith.muli %21, %c256_i32_9 : i32
      %c256_i32_10 = arith.constant 256 : i32
      %23 = arith.muli %arg3, %c256_i32_10 : i32
      %24 = arith.addi %22, %23 : i32
      %25 = tpu.assume_multiple %24, 256 : i32
      %c0_11 = arith.constant 0 : index
      %c0_12 = arith.constant 0 : index
      %26 = vector.load %arg8[%c0_11, %c0_12] : memref<256x128xf32, #tpu.memory_space<vmem>>, vector<256x128xf32>
      %27 = arith.index_cast %25 : i32 to index
      %c0_13 = arith.constant 0 : index
      %28 = vector.load %arg7[%27, %c0_13] : memref<512x128xbf16, #tpu.memory_space<vmem>>, vector<256x128xbf16>
      %cst = arith.constant dense<0.000000e+00> : vector<256x128xf32>
      %29 = tpu.matmul %7, %28, %cst {dimension_numbers = #tpu.dot_dimension_numbers<[1], [0], [0], [1], [0, 0, 1, 1], [], []>} : vector<256x256xbf16>, vector<256x128xbf16>, vector<256x128xf32> -> vector<256x128xf32>
      %30 = arith.addf %26, %29 : vector<256x128xf32>
      %c0_14 = arith.constant 0 : index
      %c0_15 = arith.constant 0 : index
      %31 = vector.load %arg8[%c0_14, %c0_15] : memref<256x128xf32, #tpu.memory_space<vmem>>, vector<256x128xf32>
      tpu.vector_store %arg8[%c0_14, %c0_15], %30 {strides = array<i32>} : memref<256x128xf32, #tpu.memory_space<vmem>>, vector<256x128xf32>,
    } else {
    }
    %c0_i32_6 = arith.constant 0 : i32
    %17 = arith.cmpi eq, %arg3, %c0_i32_6 : i32
    %18 = arith.extui %17 : i1 to i32
    %c0_i32_7 = arith.constant 0 : i32
    %19 = arith.cmpi ne, %18, %c0_i32_7 : i32
    scf.if %19 {
      %c0_8 = arith.constant 0 : index
      %c0_9 = arith.constant 0 : index
      %20 = vector.load %arg8[%c0_8, %c0_9] : memref<256x128xf32, #tpu.memory_space<vmem>>, vector<256x128xf32>
      %c0_10 = arith.constant 0 : index
      %c0_11 = arith.constant 0 : index
      %c0_12 = arith.constant 0 : index
      %c0_13 = arith.constant 0 : index
      %21 = vector.load %arg6[%c0_10, %c0_11, %c0_12, %c0_13] : memref<1x1x256x128xf32, #tpu.memory_space<vmem>>, vector<1x1x256x128xf32>
      %22 = vector.shape_cast %21 : vector<1x1x256x128xf32> to vector<256x128xf32>
      %23 = vector.shape_cast %20 : vector<256x128xf32> to vector<1x1x256x128xf32>
      tpu.vector_store %arg6[%c0_10, %c0_11, %c0_12, %c0_13], %23 {strides = array<i32>} : memref<1x1x256x128xf32, #tpu.memory_space<vmem>>, vector<1x1x256x128xf32>,
      %c1_i32 = arith.constant 1 : i32
      %24 = arith.andi %arg1, %c1_i32 : i32
      %c256_i32_14 = arith.constant 256 : i32
      %25 = arith.muli %24, %c256_i32_14 : i32
      %c256_i32_15 = arith.constant 256 : i32
      %26 = arith.muli %arg2, %c256_i32_15 : i32
      %27 = arith.addi %25, %26 : i32
      %28 = tpu.assume_multiple %27, 256 : i32
      %29 = arith.truncf %20 : vector<256x128xf32> to vector<256x128xbf16>
      %30 = arith.index_cast %28 : i32 to index
      %c0_16 = arith.constant 0 : index
      %31 = vector.load %arg7[%30, %c0_16] : memref<512x128xbf16, #tpu.memory_space<vmem>>, vector<256x128xbf16>
      tpu.vector_store %arg7[%30, %c0_16], %29 {strides = array<i32>} : memref<512x128xbf16, #tpu.memory_space<vmem>>, vector<256x128xbf16>,
    } else {
    }
    return
  }
  func.func @transform_0(%arg0: i32, %arg1: i32, %arg2: i32, %arg3: i32) -> (i32, i32) {
    %c0_i32 = arith.constant 0 : i32
    %0 = arith.cmpi eq, %arg1, %c0_i32 : i32
    %c0_i32_0 = arith.constant 0 : i32
    %1 = arith.select %0, %arg3, %c0_i32_0 : i32
    %c0_i32_1 = arith.constant 0 : i32
    %c0_i32_2 = arith.constant 0 : i32
    return %1, %c0_i32_1 : i32, i32
  }
  func.func @transform_1(%arg0: i32, %arg1: i32, %arg2: i32, %arg3: i32) -> (i32, i32, i32) {
    %c0_i32 = arith.constant 0 : i32
    %c0_i32_0 = arith.constant 0 : i32
    %c0_i32_1 = arith.constant 0 : i32
    return %arg0, %c0_i32, %c0_i32_0 : i32, i32, i32
  }
  func.func @transform_2(%arg0: i32, %arg1: i32, %arg2: i32, %arg3: i32) -> (i32, i32, i32, i32) {
    %c0_i32 = arith.constant 0 : i32
    %c0_i32_0 = arith.constant 0 : i32
    return %arg1, %arg0, %arg2, %c0_i32 : i32, i32, i32, i32
  }
}

</mosaic_0001>

<bundles_post_ra>
// kernel: tpu_custom_call.1
= control target key start
LH: loop header
LB: loop body
LE: loop exit
PB: predicated region body
PF: predicated region fallthrough
CT: control target
= control target key end

     0   :  { %s3570_s0 = inlined_call_operand.hbm [shape: bf16[256,128], index: 0, kind: input, shape index: {}]   ;;  %s3571_s1 = inlined_call_operand.hbm [shape: bf16[4,256,256], index: 1, kind: input, shape index: {}]   ;;  %s3572_s2 = inlined_call_operand.hbm [shape: f32[3,4,256,128], index: 2, kind: output, shape index: {}]  }
   0x1   :  { %3576 = sst [smem:[#allocation89_spill]] %s3570_s0 }
   0x2   :  { %7 = vsyncpa [#allocation5], 0 }
   0x3   :  { %9 = vsyncpa [#allocation5 + $0x1], 0 }
   0x4   :  { %10 = vsyncpa [#allocation8], 0 }
   0x5   :  { %12 = vsyncpa [#allocation8 + $0x1], 0 }
   0x6   :  { %13 = vsyncpa [#allocation6], 0 }
   0x7   :  { %15 = vsyncpa [#allocation6 + $0x1], 0  ;;  %s2710_s9 = smov 0   ;;  %s2712_s10 = smov 0  }
   0x8   :  { %s2714_s11 = smov 0   ;;  %s2716_s12 = smov 0  }
   0x9   :  { %s2718_s13 = smov 0   ;;  %s2720_s14 = smov 0  }
   0xa   :  { %s2722_s15 = smov 0   ;;  %s2724_s16 = smov 0  }
   0xb   :  { %s2726_s17 = smov 0   ;;  %s2728_s18 = smov 0  }
   0xc   :  { %s2730_s19 = smov 0  }
   0xd LB: > { %3577 = sst [smem:[#allocation13_spill]] %s2677_s17  ;;  %p92_p0 = scmp.eq.s32.totalorder %s2685_s19, 0  ;;  %s2685_s19 = sphi %s2730_s19, %s21_s19   ;;  %s2681_s18 = sphi %s2728_s18, %s3743_s18   ;;  %s2677_s17 = sphi %s2726_s17, %s3734_s17   ;;  %s2673_s16 = sphi %s2724_s16, %s3742_s16   ;;  %s2669_s15 = sphi %s2722_s15, %s3733_s15   ;;  %s2665_s14 = sphi %s2720_s14, %s3741_s14   ;;  %s2661_s13 = sphi %s2718_s13, %s3740_s13   ;;  %s2657_s12 = sphi %s2716_s12, %s3739_s12   ;;  %s2653_s11 = sphi %s2714_s11, %s3738_s11   ;;  %s2649_s10 = sphi %s2712_s10, %s3737_s10   ;;  %s2645_s9 = sphi %s2710_s9, %s3736_s9  }
   0xe   : > { %p2399_p1 = scmp.lt.s32.totalorder %s2685_s19, 12  ;;  %s3578_s0 = sld [smem:[#allocation89_spill]] }
   0xf   : > { %s2687_s23 = smov [#allocation4]   ;;  %p1756_p3 = scmp.ge.s32.totalorder %s2685_s19, 1 }
  0x10   : > { %s165_s24 = sshll.u32 %s2687_s23, 4  ;;  %p2389_p2 = pnand %p2399_p1, %p92_p0  ;;  %s166_s24 = int_to_ptr.vmem [resolvable:$true] %s165_s24 }
  0x11   : > { %s2688_s25 = smov 64   ;;  %s2689_s26 = smov 4  }
  0x12   : > { %p195_p4 = scmp.lt.s32.totalorder %s2685_s19, 13  ;;  %s1748_s28 = sadd.s32 4294967295, %s2685_s19  }
  0x13   : > { %s1749_s29 = sadd.s32 4294967294, %s2685_s19   ;;  %s43_s30 = sadd.s32 1, %s2677_s17 }
  0x14   : > { %s163_s22 = sshll.u32 %s3578_s0, 4  ;;  %p2776_p5 = pnand %p1756_p3, %p195_p4  ;;  %s164_s22 = int_to_ptr.hbm [resolvable:$true] %s163_s22 }
  0x15   : > { %2391 = dma.hbm_to_vmem [thread:$0]  (!%p2389_p2), %s164_s22, 2048, %s166_s24, [#allocation5], %s2688_s25, %s2688_s25, %s2689_s26  }
  0x16   : > { %s47_s3 = sadd.s32 1, %s2681_s18  ;;  %p45_p6 = scmp.ge.s32.totalorder %s43_s30, 3 }
  0x17   : > { %s84_s4 = sadd.s32 1, %s2665_s14  ;;  %p91_p7 = scmp.ne.s32.totalorder %s2665_s14, %s2661_s13 }
  0x18   : > { %p97_p8 = scmp.ne.s32.totalorder %s2661_s13, %s2657_s12  ;;  %s3745_s30 = smov (%p45_p6, %s43_s30), 0 }
  0x19   : > { %3580 = sst [smem:[#allocation14_spill]] %s3745_s30  ;;  %s3747_s3 = smov (!%p45_p6, %s47_s3), %s2681_s18 }
  0x1a   : > { %p2794_p9 = por %p92_p0, %p91_p7  ;;  %p2798_p10 = scmp.eq.s32.totalorder %s1748_s28, 0 }
  0x1b   : > { %p49_p11 = scmp.ge.s32.totalorder %s3747_s3, 4  ;;  %s107_s7 = ssub.s32 %s2677_s17, %s3745_s30 }
  0x1c   : > { %p2806_p12 = por %p2798_p10, %p97_p8  ;;  %s114_s12 = sadd.s32 1, %s2653_s11 }
  0x1d   : > { %s3749_s3 = smov (%p49_p11, %s3747_s3), 0  ;;  %p124_p13 = scmp.ne.s32.totalorder %s2653_s11, %s2649_s10 }
  0x1e   : > { %3584 = sst [smem:[#allocation15_spill]] %s3749_s3  ;;  %p125_p0 = scmp.eq.s32.totalorder %s1748_s28, 11 }
  0x1f   : > { %s81_s20 = ssub.s32 %s2681_s18, %s3749_s3  ;;  %p130_p2 = scmp.ne.s32.totalorder %s2649_s10, %s2645_s9 }
  0x20   : > { %p82_p3 = scmp.eq.s32.totalorder %s81_s20, 0  ;;  %s109_s21 = sor.u32 %s107_s7, %s81_s20 }
  0x21   : > { %p112_p4 = scmp.eq.s32.totalorder %s109_s21, 0  ;;  %p2819_p6 = por %p125_p0, %p124_p13 }
  0x22   : > { %s2824_s23 = scalar_select %p82_p3, %s2665_s14, %s84_s4  }
  0x23   : > { %s2827_s24 = scalar_select %p112_p4, %s2653_s11, %s114_s12  }
  0x24   : > { %p131_p7 = scmp.eq.s32.totalorder %s1749_s29, 11  ;;  %s175_s25 = sand.u32 1, %s2665_s14  }
  0x25   : > { %s1753_s26 = sshll.u32 %s175_s25, 8  ;;  %s2156_s0 = sshll.u32 %s2681_s18, 8 }
  0x26   : > { %p2830_p8 = por %p131_p7, %p130_p2  ;;  %s179_s3 = scalar_lea.vmem [#allocation7], %s1753_s26 }
  0x27   : > { %s187_s30 = sshll.u32 %s179_s3, 4  ;;  %s184_s21 = scalar_lea.hbm %s3571_s1, %s2156_s0  ;;  %s188_s30 = int_to_ptr.vmem [resolvable:$true] %s187_s30 }
  0x28   : > { %s185_s17 = sshll.u32 %s184_s21, 4  ;;  %p2392_p11 = pnand %p2399_p1, %p2794_p9  ;;  %s186_s17 = int_to_ptr.hbm [resolvable:$true] %s185_s17 }
  0x29   : > { %s176_s29 = scalar_lea.sflag [#allocation8], %s175_s25  ;;  %s2690_s4 = smov 128  }
  0x2a   : > { %s2691_s12 = smov 8   ;;  %199 = sbr.rel (%p2776_p5) target bundleno = 797 (0x31d), region = 28 }
  0x2b   : > { %2394 = dma.hbm_to_vmem [thread:$0]  (!%p2392_p11), %s186_s17, 4096, %s188_s30, %s176_s29, %s2690_s4, %s2690_s4, %s2691_s12  }
  0x2f   : > { %2632 = dma.done.wait (%p2798_p10), [#allocation5], 2048  }
  0x30   : > { %2634 = vsyncadd (%p2798_p10), [#allocation5], 4294965248  ;;  %s211_s0 = sand.u32 1, %s2661_s13  }
  0x31   : > { %s1758_s3 = sshll.u32 %s211_s0, 8  ;;  %s212_s5 = scalar_lea.sflag [#allocation8], %s211_s0 }
  0x32   : > { %s2849_s26 = scalar_lea.vmem [#allocation7], %s1758_s3 }
  0x33   : > { %2636 = dma.done.wait (%p2806_p12), %s212_s5, 4096  }
  0x34   : > { %2638 = vsyncadd (%p2806_p12), %s212_s5, 4294963200  ;;  %s239_s17 = sand.u32 1, %s2649_s10   ;;  %v2861_v0 = vld [vmem:[%s2849_s26 + $0x4] sm:$0xf]  ;;  %v2864_v1 = vld [vmem:[%s2849_s26] sm:$0xf] }
  0x35   : > { %s2858_s27 = sshll.u32 %s239_s17, 8  ;;  %3587 = vst [vmem:[#allocation16_spill] sm:$0xff] %v2861_v0  ;;  %v2867_v2 = vld [vmem:[%s2849_s26 + $0x4] sm:$0xf]  ;;  %v2870_v3 = vld [vmem:[%s2849_s26] sm:$0xf] }
  0x36   : > { %3588 = vst [vmem:[#allocation17_spill] sm:$0xff] %v2864_v1  ;;  %v2873_v4 = vld [vmem:[%s2849_s26 + $0x8] sm:$0xf0]  ;;  %v2876_v5 = vld [vmem:[%s2849_s26 + $0x4] sm:$0xf0]  ;;  %s3245_s30 = scalar_lea.vmem [#allocation9], %s2858_s27 }
  0x37   : > { %3589 = vst [vmem:[#allocation18_spill] sm:$0xff] %v2873_v4  ;;  %v2879_v6 = vld [vmem:[%s2849_s26 + $0x8] sm:$0xf0]  ;;  %v2882_v7 = vld [vmem:[%s2849_s26 + $0x4] sm:$0xf0]  ;;  %p1760_p1 = scmp.ne.s32.totalorder %s2669_s15, 0 }
  0x38   : > { %3590 = vst [vmem:[#allocation19_spill] sm:$0xff] %v2876_v5  ;;  %v2885_v8 = vld [vmem:[%s2849_s26 + $0x14] sm:$0xf]  ;;  %v2888_v9 = vld [vmem:[%s2849_s26 + $0x10] sm:$0xf] }
  0x39   : > { %3591 = vst [vmem:[#allocation20_spill] sm:$0xff] %v2885_v8  ;;  %v2891_v10 = vld [vmem:[%s2849_s26 + $0x14] sm:$0xf]  ;;  %v2894_v11 = vld [vmem:[%s2849_s26 + $0x10] sm:$0xf] }
  0x3a   : > { %3592 = vst [vmem:[#allocation21_spill] sm:$0xff] %v2888_v9  ;;  %v2897_v12 = vld [vmem:[%s2849_s26 + $0x18] sm:$0xf0]  ;;  %v2900_v13 = vld [vmem:[%s2849_s26 + $0x14] sm:$0xf0] }
  0x3b   : > { %3593 = vst [vmem:[#allocation22_spill] sm:$0xff] %v2897_v12  ;;  %v2903_v14 = vld [vmem:[%s2849_s26 + $0x18] sm:$0xf0]  ;;  %v2906_v15 = vld [vmem:[%s2849_s26 + $0x14] sm:$0xf0] }
  0x3c   : > { %3594 = vst [vmem:[#allocation23_spill] sm:$0xff] %v2900_v13  ;;  %v2909_v16 = vld [vmem:[%s2849_s26 + $0x24] sm:$0xf]  ;;  %v2912_v17 = vld [vmem:[%s2849_s26 + $0x20] sm:$0xf] }
  0x3d   : > { %3595 = vst [vmem:[#allocation24_spill] sm:$0xff] %v2909_v16  ;;  %v2915_v18 = vld [vmem:[%s2849_s26 + $0x24] sm:$0xf]  ;;  %v2918_v19 = vld [vmem:[%s2849_s26 + $0x20] sm:$0xf] }
  0x3e   : > { %3596 = vst [vmem:[#allocation25_spill] sm:$0xff] %v2912_v17  ;;  %v2921_v20 = vld [vmem:[%s2849_s26 + $0x28] sm:$0xf0]  ;;  %v2924_v21 = vld [vmem:[%s2849_s26 + $0x24] sm:$0xf0] }
  0x3f   : > { %3597 = vst [vmem:[#allocation26_spill] sm:$0xff] %v2921_v20  ;;  %v2927_v22 = vld [vmem:[%s2849_s26 + $0x28] sm:$0xf0]  ;;  %v2930_v23 = vld [vmem:[%s2849_s26 + $0x24] sm:$0xf0] }
  0x40   : > { %3598 = vst [vmem:[#allocation27_spill] sm:$0xff] %v2924_v21  ;;  %v2933_v24 = vld [vmem:[%s2849_s26 + $0x34] sm:$0xf]  ;;  %v2936_v25 = vld [vmem:[%s2849_s26 + $0x30] sm:$0xf] }
  0x41   : > { %3599 = vst [vmem:[#allocation28_spill] sm:$0xff] %v2933_v24  ;;  %v2939_v26 = vld [vmem:[%s2849_s26 + $0x34] sm:$0xf]  ;;  %v2942_v27 = vld [vmem:[%s2849_s26 + $0x30] sm:$0xf] }
  0x42   : > { %3600 = vst [vmem:[#allocation29_spill] sm:$0xff] %v2936_v25  ;;  %v2945_v28 = vld [vmem:[%s2849_s26 + $0x38] sm:$0xf0]  ;;  %v2948_v29 = vld [vmem:[%s2849_s26 + $0x34] sm:$0xf0] }
  0x43   : > { %3601 = vst [vmem:[#allocation30_spill] sm:$0xff] %v2945_v28  ;;  %v2951_v30 = vld [vmem:[%s2849_s26 + $0x38] sm:$0xf0]  ;;  %v2954_v31 = vld [vmem:[%s2849_s26 + $0x34] sm:$0xf0] }
  0x44   : > { %3602 = vst [vmem:[#allocation31_spill] sm:$0xff] %v2948_v29  ;;  %v2957_v32 = vld [vmem:[%s2849_s26 + $0x44] sm:$0xf]  ;;  %v2960_v33 = vld [vmem:[%s2849_s26 + $0x40] sm:$0xf] }
  0x45   : > { %3603 = vst [vmem:[#allocation32_spill] sm:$0xff] %v2957_v32  ;;  %v2963_v34 = vld [vmem:[%s2849_s26 + $0x44] sm:$0xf]  ;;  %v2966_v35 = vld [vmem:[%s2849_s26 + $0x40] sm:$0xf] }
  0x46   : > { %3604 = vst [vmem:[#allocation33_spill] sm:$0xff] %v2960_v33  ;;  %v2969_v36 = vld [vmem:[%s2849_s26 + $0x48] sm:$0xf0]  ;;  %v2972_v37 = vld [vmem:[%s2849_s26 + $0x44] sm:$0xf0] }
  0x47   : > { %3605 = vst [vmem:[#allocation34_spill] sm:$0xff] %v2969_v36  ;;  %v2975_v38 = vld [vmem:[%s2849_s26 + $0x48] sm:$0xf0]  ;;  %v2978_v39 = vld [vmem:[%s2849_s26 + $0x44] sm:$0xf0] }
  0x48   : > { %3606 = vst [vmem:[#allocation35_spill] sm:$0xff] %v2972_v37  ;;  %v2981_v40 = vld [vmem:[%s2849_s26 + $0x54] sm:$0xf]  ;;  %v2984_v41 = vld [vmem:[%s2849_s26 + $0x50] sm:$0xf] }
  0x49   : > { %3607 = vst [vmem:[#allocation36_spill] sm:$0xff] %v2981_v40  ;;  %v2987_v42 = vld [vmem:[%s2849_s26 + $0x54] sm:$0xf]  ;;  %v2990_v43 = vld [vmem:[%s2849_s26 + $0x50] sm:$0xf] }
  0x4a   : > { %3608 = vst [vmem:[#allocation37_spill] sm:$0xff] %v2984_v41  ;;  %v2993_v44 = vld [vmem:[%s2849_s26 + $0x58] sm:$0xf0]  ;;  %v2996_v45 = vld [vmem:[%s2849_s26 + $0x54] sm:$0xf0] }
  0x4b   : > { %3609 = vst [vmem:[#allocation38_spill] sm:$0xff] %v2993_v44  ;;  %v2999_v46 = vld [vmem:[%s2849_s26 + $0x58] sm:$0xf0]  ;;  %v3002_v47 = vld [vmem:[%s2849_s26 + $0x54] sm:$0xf0] }
  0x4c   : > { %3610 = vst [vmem:[#allocation39_spill] sm:$0xff] %v2996_v45  ;;  %v3005_v48 = vld [vmem:[%s2849_s26 + $0x64] sm:$0xf]  ;;  %v3008_v49 = vld [vmem:[%s2849_s26 + $0x60] sm:$0xf] }
  0x4d   : > { %3611 = vst [vmem:[#allocation40_spill] sm:$0xff] %v3005_v48  ;;  %v3011_v50 = vld [vmem:[%s2849_s26 + $0x64] sm:$0xf]  ;;  %v3014_v51 = vld [vmem:[%s2849_s26 + $0x60] sm:$0xf] }
  0x4e   : > { %3612 = vst [vmem:[#allocation41_spill] sm:$0xff] %v3008_v49  ;;  %v3017_v52 = vld [vmem:[%s2849_s26 + $0x68] sm:$0xf0]  ;;  %v3020_v53 = vld [vmem:[%s2849_s26 + $0x64] sm:$0xf0] }
  0x4f   : > { %3613 = vst [vmem:[#allocation42_spill] sm:$0xff] %v3017_v52  ;;  %v3023_v54 = vld [vmem:[%s2849_s26 + $0x68] sm:$0xf0]  ;;  %v3026_v55 = vld [vmem:[%s2849_s26 + $0x64] sm:$0xf0] }
  0x50   : > { %3614 = vst [vmem:[#allocation43_spill] sm:$0xff] %v3020_v53  ;;  %v3029_v56 = vld [vmem:[%s2849_s26 + $0x74] sm:$0xf]  ;;  %v3032_v57 = vld [vmem:[%s2849_s26 + $0x70] sm:$0xf] }
  0x51   : > { %3615 = vst [vmem:[#allocation44_spill] sm:$0xff] %v3029_v56  ;;  %v3035_v58 = vld [vmem:[%s2849_s26 + $0x74] sm:$0xf]  ;;  %v3038_v59 = vld [vmem:[%s2849_s26 + $0x70] sm:$0xf] }
  0x52   : > { %3616 = vst [vmem:[#allocation45_spill] sm:$0xff] %v3032_v57  ;;  %v3041_v60 = vld [vmem:[%s2849_s26 + $0x78] sm:$0xf0]  ;;  %v3044_v61 = vld [vmem:[%s2849_s26 + $0x74] sm:$0xf0] }
  0x53   : > { %3617 = vst [vmem:[#allocation46_spill] sm:$0xff] %v3035_v58  ;;  %v3047_v62 = vld [vmem:[%s2849_s26 + $0x78] sm:$0xf0]  ;;  %v3050_v63 = vld [vmem:[%s2849_s26 + $0x74] sm:$0xf0] }
  0x54   : > { %3618 = vst [vmem:[#allocation47_spill] sm:$0xff] %v3038_v59  ;;  %v3053_v56 = vld [vmem:[%s2849_s26 + $0x84] sm:$0xf]  ;;  %v3056_v57 = vld [vmem:[%s2849_s26 + $0x80] sm:$0xf] }
  0x55   : > { %3619 = vst [vmem:[#allocation48_spill] sm:$0xff] %v3041_v60  ;;  %v3059_v48 = vld [vmem:[%s2849_s26 + $0x84] sm:$0xf]  ;;  %v3062_v60 = vld [vmem:[%s2849_s26 + $0x80] sm:$0xf] }
  0x56   : > { %3620 = vst [vmem:[#allocation49_spill] sm:$0xff] %v3044_v61  ;;  %v3065_v61 = vld [vmem:[%s2849_s26 + $0x88] sm:$0xf0]  ;;  %v3068_v52 = vld [vmem:[%s2849_s26 + $0x84] sm:$0xf0] }
  0x57   : > { %3621 = vst [vmem:[#allocation50_spill] sm:$0xff] %v3047_v62  ;;  %v3071_v53 = vld [vmem:[%s2849_s26 + $0x88] sm:$0xf0]  ;;  %v3074_v49 = vld [vmem:[%s2849_s26 + $0x84] sm:$0xf0] }
  0x58   : > { %3622 = vst [vmem:[#allocation51_spill] sm:$0xff] %v3050_v63  ;;  %v3077_v40 = vld [vmem:[%s2849_s26 + $0x94] sm:$0xf]  ;;  %v3080_v44 = vld [vmem:[%s2849_s26 + $0x90] sm:$0xf] }
  0x59   : > { %3623 = vst [vmem:[#allocation52_spill] sm:$0xff] %v3053_v56  ;;  %v3083_v45 = vld [vmem:[%s2849_s26 + $0x94] sm:$0xf]  ;;  %v3086_v41 = vld [vmem:[%s2849_s26 + $0x90] sm:$0xf] }
  0x5a   : > { %3624 = vst [vmem:[#allocation53_spill] sm:$0xff] %v3056_v57  ;;  %v3089_v32 = vld [vmem:[%s2849_s26 + $0x98] sm:$0xf0]  ;;  %v3092_v36 = vld [vmem:[%s2849_s26 + $0x94] sm:$0xf0] }
  0x5b   : > { %3625 = vst [vmem:[#allocation54_spill] sm:$0xff] %v3065_v61  ;;  %v3095_v37 = vld [vmem:[%s2849_s26 + $0x98] sm:$0xf0]  ;;  %v3098_v33 = vld [vmem:[%s2849_s26 + $0x94] sm:$0xf0] }
  0x5c   : > { %3626 = vst [vmem:[#allocation55_spill] sm:$0xff] %v3068_v52  ;;  %v3101_v24 = vld [vmem:[%s2849_s26 + $0xa4] sm:$0xf]  ;;  %v3104_v28 = vld [vmem:[%s2849_s26 + $0xa0] sm:$0xf] }
  0x5d   : > { %3627 = vst [vmem:[#allocation56_spill] sm:$0xff] %v3077_v40  ;;  %v3107_v29 = vld [vmem:[%s2849_s26 + $0xa4] sm:$0xf]  ;;  %v3110_v25 = vld [vmem:[%s2849_s26 + $0xa0] sm:$0xf] }
  0x5e   : > { %3628 = vst [vmem:[#allocation57_spill] sm:$0xff] %v3080_v44  ;;  %v3113_v16 = vld [vmem:[%s2849_s26 + $0xa8] sm:$0xf0]  ;;  %v3116_v20 = vld [vmem:[%s2849_s26 + $0xa4] sm:$0xf0] }
  0x5f   : > { %3629 = vst [vmem:[#allocation58_spill] sm:$0xff] %v3089_v32  ;;  %v3119_v21 = vld [vmem:[%s2849_s26 + $0xa8] sm:$0xf0]  ;;  %v3128_v17 = vld [vmem:[%s2849_s26 + $0xb0] sm:$0xf] }
  0x60   : > { %3630 = vst [vmem:[#allocation59_spill] sm:$0xff] %v3092_v36  ;;  %v3131_v40 = vld [vmem:[%s2849_s26 + $0xb4] sm:$0xf]  ;;  %v3140_v32 = vld [vmem:[%s2849_s26 + $0xb4] sm:$0xf0] }
  0x61   : > { %3631 = vst [vmem:[#allocation60_spill] sm:$0xff] %v3101_v24  ;;  %v3122_v24 = vld [vmem:[%s2849_s26 + $0xa4] sm:$0xf0]  ;;  %v3143_v8 = vld [vmem:[%s2849_s26 + $0xb8] sm:$0xf0] }
  0x62   : > { %3632 = vst [vmem:[#allocation61_spill] sm:$0xff] %v3104_v28  ;;  %v3125_v28 = vld [vmem:[%s2849_s26 + $0xb4] sm:$0xf]  ;;  %v3152_v12 = vld [vmem:[%s2849_s26 + $0xc0] sm:$0xf] }
  0x63   : > { %3633 = vst [vmem:[#allocation62_spill] sm:$0xff] %v3113_v16  ;;  %v3134_v16 = vld [vmem:[%s2849_s26 + $0xb0] sm:$0xf]  ;;  %v3155_v36 = vld [vmem:[%s2849_s26 + $0xc4] sm:$0xf] }
  0x64   : > { %3634 = vst [vmem:[#allocation63_spill] sm:$0xff] %v3116_v20  ;;  %v3137_v20 = vld [vmem:[%s2849_s26 + $0xb8] sm:$0xf0]  ;;  %v3164_v44 = vld [vmem:[%s2849_s26 + $0xc4] sm:$0xf0] }
  0x65   : > { %3635 = vst [vmem:[#allocation64_spill] sm:$0xff] %v3125_v28  ;;  %v3146_v28 = vld [vmem:[%s2849_s26 + $0xb4] sm:$0xf0]  ;;  %v3167_v13 = vld [vmem:[%s2849_s26 + $0xc8] sm:$0xf0] }
  0x66   : > { %3636 = vst [vmem:[#allocation65_spill] sm:$0xff] %v3128_v17  ;;  %v3149_v17 = vld [vmem:[%s2849_s26 + $0xc4] sm:$0xf]  ;;  %v3176_v9 = vld [vmem:[%s2849_s26 + $0xd0] sm:$0xf] }
  0x67   : > { %3637 = vst [vmem:[#allocation66_spill] sm:$0xff] %v3137_v20  ;;  %v3158_v20 = vld [vmem:[%s2849_s26 + $0xc0] sm:$0xf]  ;;  %v3179_v56 = vld [vmem:[%s2849_s26 + $0xd4] sm:$0xf] }
  0x68   : > { %3638 = vst [vmem:[#allocation67_spill] sm:$0xff] %v3140_v32  ;;  %v3161_v32 = vld [vmem:[%s2849_s26 + $0xc8] sm:$0xf0]  ;;  %v3188_v61 = vld [vmem:[%s2849_s26 + $0xd4] sm:$0xf0] }
  0x69   : > { %3639 = vst [vmem:[#allocation68_spill] sm:$0xff] %v3149_v17  ;;  %v3170_v17 = vld [vmem:[%s2849_s26 + $0xc4] sm:$0xf0]  ;;  %v3191_v0 = vld [vmem:[%s2849_s26 + $0xd8] sm:$0xf0] }
  0x6a   : > { %3640 = vst [vmem:[#allocation69_spill] sm:$0xff] %v3152_v12  ;;  %v3173_v12 = vld [vmem:[%s2849_s26 + $0xd4] sm:$0xf]  ;;  %v3200_v4 = vld [vmem:[%s2849_s26 + $0xe0] sm:$0xf] }
  0x6b   : > { %3641 = vst [vmem:[#allocation70_spill] sm:$0xff] %v3161_v32  ;;  %v3182_v32 = vld [vmem:[%s2849_s26 + $0xd0] sm:$0xf]  ;;  %v3203_v52 = vld [vmem:[%s2849_s26 + $0xe4] sm:$0xf] }
  0x6c   : > { %3642 = vst [vmem:[#allocation71_spill] sm:$0xff] %v3164_v44  ;;  %v3185_v44 = vld [vmem:[%s2849_s26 + $0xd8] sm:$0xf0]  ;;  %v3206_v57 = vld [vmem:[%s2849_s26 + $0xe0] sm:$0xf] }
  0x6d   : > { %3643 = vst [vmem:[#allocation72_spill] sm:$0xff] %v3173_v12  ;;  %v3194_v12 = vld [vmem:[%s2849_s26 + $0xd4] sm:$0xf0]  ;;  %v3209_v5 = vld [vmem:[%s2849_s26 + $0xe8] sm:$0xf0] }
  0x6e   : > { %3644 = vst [vmem:[#allocation73_spill] sm:$0xff] %v3176_v9  ;;  %v3197_v9 = vld [vmem:[%s2849_s26 + $0xe4] sm:$0xf]  ;;  %v3218_v1 = vld [vmem:[%s2849_s26 + $0xe4] sm:$0xf0] }
  0x6f   : > { %3645 = vst [vmem:[#allocation74_spill] sm:$0xff] %v3185_v44  ;;  %v3212_v44 = vld [vmem:[%s2849_s26 + $0xe4] sm:$0xf0]  ;;  %v3221_v58 = vld [vmem:[%s2849_s26 + $0xf4] sm:$0xf] }
  0x70   : > { %3646 = vst [vmem:[#allocation75_spill] sm:$0xff] %v3188_v61  ;;  %v3215_v61 = vld [vmem:[%s2849_s26 + $0xe8] sm:$0xf0]  ;;  %v3224_v62 = vld [vmem:[%s2849_s26 + $0xf0] sm:$0xf] }
  0x71   : > { %3647 = vst [vmem:[#allocation76_spill] sm:$0xff] %v3197_v9  ;;  %v3227_v63 = vld [vmem:[%s2849_s26 + $0xf4] sm:$0xf]  ;;  %v3230_v9 = vld [vmem:[%s2849_s26 + $0xf0] sm:$0xf] }
  0x72   : > { %3648 = vst [vmem:[#allocation77_spill] sm:$0xff] %v3200_v4  ;;  %v3233_v4 = vld [vmem:[%s2849_s26 + $0xf8] sm:$0xf0]  ;;  %v3236_v59 = vld [vmem:[%s2849_s26 + $0xf4] sm:$0xf0] }
  0x73   : > { %3649 = vst [vmem:[#allocation78_spill] sm:$0xff] %v3203_v52  ;;  %v3239_v52 = vld [vmem:[%s2849_s26 + $0xf8] sm:$0xf0] }
  0x74   : > { %3650 = vst [vmem:[#allocation79_spill] sm:$0xff] %v3209_v5  ;;  %v3242_v5 = vld [vmem:[%s2849_s26 + $0xf4] sm:$0xf0] }
  0x75   : > { %3651 = vst [vmem:[#allocation80_spill] sm:$0xff] %v3212_v44  ;;  %v2692_v44 = vmov 0.0  }
  0x76   : > { %3652 = vst [vmem:[#allocation81_spill] sm:$0xff] %v3221_v58 }
  0x77   : > { %3653 = vst [vmem:[#allocation82_spill] sm:$0xff] %v3224_v62 }
  0x78   : > { %3654 = vst [vmem:[#allocation83_spill] sm:$0xff] %v3227_v63 }
  0x79   : > { %3655 = vst [vmem:[#allocation84_spill] sm:$0xff] %v3230_v9 }
  0x7a   : > { %3656 = vst [vmem:[#allocation85_spill] sm:$0xff] %v3233_v4 }
  0x7b   : > { %3657 = vst [vmem:[#allocation86_spill] sm:$0xff] %v3236_v59 }
  0x7c   : > { %3658 = vst [vmem:[#allocation87_spill] sm:$0xff] %v3239_v52 }
  0x7d   : > { %3659 = vst [vmem:[#allocation88_spill] sm:$0xff] %v3242_v5 }
  0x7e   : > { %292 = vst [vmem:[#allocation3 + $0xb0] sm:$0xff] %v2692_v44 }
  0x7f   : > { %293 = vst [vmem:[#allocation3] sm:$0xff] %v2692_v44 }
  0x80   : > { %294 = vst [vmem:[#allocation3 + $0xd8] sm:$0xff] %v2692_v44 }
  0x81   : > { %295 = vst [vmem:[#allocation3 + $0x18] sm:$0xff] %v2692_v44 }
  0x82   : > { %296 = vst [vmem:[#allocation3 + $0x50] sm:$0xff] %v2692_v44 }
  0x83   : > { %297 = vst [vmem:[#allocation3 + $0x68] sm:$0xff] %v2692_v44 }
  0x84   : > { %298 = vst [vmem:[#allocation3 + $0x30] sm:$0xff] %v2692_v44 }
  0x85   : > { %299 = vst [vmem:[#allocation3 + $0x48] sm:$0xff] %v2692_v44 }
  0x86   : > { %300 = vst [vmem:[#allocation3 + $0x80] sm:$0xff] %v2692_v44 }
  0x87   : > { %301 = vst [vmem:[#allocation3 + $0x88] sm:$0xff] %v2692_v44 }
  0x88   : > { %302 = vst [vmem:[#allocation3 + $0xe8] sm:$0xff] %v2692_v44 }
  0x89   : > { %303 = vst [vmem:[#allocation3 + $0xb8] sm:$0xff] %v2692_v44 }
  0x8a   : > { %304 = vst [vmem:[#allocation3 + $0x60] sm:$0xff] %v2692_v44 }
  0x8b   : > { %305 = vst [vmem:[#allocation3 + $0xf0] sm:$0xff] %v2692_v44 }
  0x8c   : > { %306 = vst [vmem:[#allocation3 + $0x8] sm:$0xff] %v2692_v44 }
  0x8d   : > { %307 = vst [vmem:[#allocation3 + $0x78] sm:$0xff] %v2692_v44 }
  0x8e   : > { %308 = vst [vmem:[#allocation3 + $0x38] sm:$0xff] %v2692_v44 }
  0x8f   : > { %309 = vst [vmem:[#allocation3 + $0x58] sm:$0xff] %v2692_v44 }
  0x90   : > { %310 = vst [vmem:[#allocation3 + $0x40] sm:$0xff] %v2692_v44 }
  0x91   : > { %311 = vst [vmem:[#allocation3 + $0xc8] sm:$0xff] %v2692_v44 }
  0x92   : > { %312 = vst [vmem:[#allocation3 + $0xe0] sm:$0xff] %v2692_v44 }
  0x93   : > { %313 = vst [vmem:[#allocation3 + $0x90] sm:$0xff] %v2692_v44 }
  0x94   : > { %314 = vst [vmem:[#allocation3 + $0x70] sm:$0xff] %v2692_v44 }
  0x95   : > { %315 = vst [vmem:[#allocation3 + $0xc0] sm:$0xff] %v2692_v44 }
  0x96   : > { %316 = vst [vmem:[#allocation3 + $0xa8] sm:$0xff] %v2692_v44 }
  0x97   : > { %317 = vst [vmem:[#allocation3 + $0xd0] sm:$0xff] %v2692_v44 }
  0x98   : > { %318 = vst [vmem:[#allocation3 + $0x10] sm:$0xff] %v2692_v44 }
  0x99   : > { %319 = vst [vmem:[#allocation3 + $0x28] sm:$0xff] %v2692_v44  ;;  %327 = sbr.rel (%p1760_p1) target bundleno = 448 (0x1c0), region = 44 }
  0x9a   : > { %320 = vst [vmem:[#allocation3 + $0xa0] sm:$0xff] %v2692_v44 }
  0x9b   : > { %321 = vst [vmem:[#allocation3 + $0xf8] sm:$0xff] %v2692_v44 }
  0x9c   : > { %322 = vst [vmem:[#allocation3 + $0x20] sm:$0xff] %v2692_v44 }
  0x9d   : > { %323 = vst [vmem:[#allocation3 + $0x98] sm:$0xff] %v2692_v44 }
  0x9e   : > { %v2228_v58 = vld [vmem:[#allocation4 + $0x38] sm:$0xff]  ;;  %v2227_v59 = vld [vmem:[#allocation4 + $0x30] sm:$0xff]  ;;  %v2226_v63 = vld [vmem:[#allocation4 + $0x28] sm:$0xff] }
  0x9f   : > { %v2236_v4 = vld [vmem:[#allocation4 + $0x78] sm:$0xff]  ;;  %648 = vmatpush.bf16.msra.mxu0 %v2228_v58  ;;  %2348 = vmatpush.bf16.msra.mxu2 %v2228_v58  ;;  %v2235_v62 = vld [vmem:[#allocation4 + $0x70] sm:$0xff]  ;;  %v2234_v52 = vld [vmem:[#allocation4 + $0x68] sm:$0xff] }
  0xa0   : > { %737 = vmatpush.bf16.msra.mxu1 %v2236_v4  ;;  %2356 = vmatpush.bf16.msra.mxu3 %v2236_v4  ;;  %v2225_v44 = vld [vmem:[#allocation4 + $0x20] sm:$0xff]  ;;  %v2224_v9 = vld [vmem:[#allocation4 + $0x18] sm:$0xff]  ;;  %v2223_v4 = vld [vmem:[#allocation4 + $0x10] sm:$0xff] }
  0xa1   : > { %v2233_v5 = vld [vmem:[#allocation4 + $0x60] sm:$0xff]  ;;  %v2232_v58 = vld [vmem:[#allocation4 + $0x58] sm:$0xff] }
  0xa3   : > { %649 = vmatpush.bf16.msra.mxu0 %v2227_v59  ;;  %2349 = vmatpush.bf16.msra.mxu2 %v2227_v59  ;;  %v2231_v59 = vld [vmem:[#allocation4 + $0x50] sm:$0xff] }
  0xa4   : > { %738 = vmatpush.bf16.msra.mxu1 %v2235_v62  ;;  %2357 = vmatpush.bf16.msra.mxu3 %v2235_v62  ;;  %v2222_v62 = vld [vmem:[#allocation4 + $0x8] sm:$0xff] }
  0xa7   : > { %650 = vmatpush.bf16.msra.mxu0 %v2226_v63  ;;  %2350 = vmatpush.bf16.msra.mxu2 %v2226_v63  ;;  %v2230_v63 = vld [vmem:[#allocation4 + $0x48] sm:$0xff] }
  0xa8   : > { %739 = vmatpush.bf16.msra.mxu1 %v2234_v52  ;;  %2358 = vmatpush.bf16.msra.mxu3 %v2234_v52  ;;  %v2221_v52 = vld [vmem:[#allocation4] sm:$0xff] }
  0xab   : > { %651 = vmatpush.bf16.msra.mxu0 %v2225_v44  ;;  %2351 = vmatpush.bf16.msra.mxu2 %v2225_v44  ;;  %v2229_v44 = vld [vmem:[#allocation4 + $0x40] sm:$0xff] }
  0xac   : > { %740 = vmatpush.bf16.msra.mxu1 %v2233_v5  ;;  %2359 = vmatpush.bf16.msra.mxu3 %v2233_v5  ;;  %v1764_v5 = vor.u32 %v2882_v7, %v2870_v3  ;;  %v1772_v3 = vor.u32 %v2906_v15, %v2894_v11  ;;  %v1836_v7 = vor.u32 %v3098_v33, %v3086_v41  ;;  %v3665_v33 = vld [vmem:[#allocation50_spill] sm:$0xff] }
  0xad   : > { %v1784_v11 = vor.u32 %v2915_v18, %v2927_v22  ;;  %v1848_v15 = vor.u32 %v3107_v29, %v3119_v21  ;;  %v1796_v18 = vor.u32 %v2978_v39, %v2966_v35  ;;  %v1860_v21 = vor.u32 %v3170_v17, %v3158_v20  ;;  %v328_v39 = vld [vmem:[#allocation3 + $0xb0] sm:$0xff] }
  0xae   : > { %v1800_v22 = vor.u32 %v2963_v34, %v2975_v38  ;;  %v1872_v17 = vor.u32 %v3179_v56, %v3191_v0  ;;  %v1876_v20 = vor.u32 %v3218_v1, %v3206_v57  ;;  %v3661_v0 = vld [vmem:[#allocation47_spill] sm:$0xff]  ;;  %v3666_v34 = vld [vmem:[#allocation46_spill] sm:$0xff] }
  0xaf   : > { %652 = vmatpush.bf16.msra.mxu0 %v2224_v9  ;;  %2352 = vmatpush.bf16.msra.mxu2 %v2224_v9  ;;  %v1828_v9 = vor.u32 %v3074_v49, %v3062_v60  ;;  %v1776_v49 = vor.u32 %v2891_v10, %v2903_v14  ;;  %v1788_v10 = vor.u32 %v2954_v31, %v2942_v27  ;;  %v3664_v31 = vld [vmem:[#allocation88_spill] sm:$0xff]  ;;  %v3667_v1 = vld [vmem:[#allocation87_spill] sm:$0xff] }
  0xb0   : > { %741 = vmatpush.bf16.msra.mxu1 %v2232_v58  ;;  %2360 = vmatpush.bf16.msra.mxu3 %v2232_v58  ;;  %v1768_v58 = vor.u32 %v2867_v2, %v2879_v6  ;;  %v1840_v2 = vor.u32 %v3083_v45, %v3095_v37  ;;  %v1780_v6 = vor.u32 %v2930_v23, %v2918_v19  ;;  %v344_v45 = vld [vmem:[#allocation3 + $0x38] sm:$0xff] }
  0xb1   : > { %v1852_v14 = vor.u32 %v3146_v28, %v3134_v16  ;;  %v1792_v19 = vor.u32 %v2939_v26, %v2951_v30  ;;  %v1856_v23 = vor.u32 %v3131_v40, %v3143_v8  ;;  %v1864_v16 = vor.u32 %v3155_v36, %v3167_v13  ;;  %v3662_v28 = vld [vmem:[#allocation51_spill] sm:$0xff]  ;;  %v3663_v30 = vld [vmem:[#allocation84_spill] sm:$0xff] }
  0xb2   : > { %v1804_v8 = vor.u32 %v3002_v47, %v2990_v43  ;;  %v1812_v13 = vor.u32 %v3026_v55, %v3014_v51  ;;  %v1816_v26 = vor.u32 %v3011_v50, %v3023_v54  ;;  %v1820_v29 = vor.u32 %v3662_v28, %v3661_v0  ;;  %v3668_v36 = vld [vmem:[#allocation83_spill] sm:$0xff]  ;;  %v329_v51 = vld [vmem:[#allocation3] sm:$0xff] }
  0xb3   : > { %653 = vmatpush.bf16.msra.mxu0 %v2223_v4  ;;  %2353 = vmatpush.bf16.msra.mxu2 %v2223_v4  ;;  %v1832_v4 = vor.u32 %v3059_v48, %v3071_v53  ;;  %v1844_v48 = vor.u32 %v3122_v24, %v3110_v25  ;;  %v1868_v24 = vor.u32 %v3194_v12, %v3182_v32  ;;  %v3660_v12 = vld [vmem:[#allocation78_spill] sm:$0xff]  ;;  %v345_v60 = vld [vmem:[#allocation3 + $0x58] sm:$0xff] }
  0xb4   : > { %742 = vmatpush.bf16.msra.mxu1 %v2231_v59  ;;  %2361 = vmatpush.bf16.msra.mxu3 %v2231_v59  ;;  %v1808_v25 = vor.u32 %v2987_v42, %v2999_v46  ;;  %v1880_v27 = vor.u32 %v3660_v12, %v3215_v61  ;;  %v1884_v32 = vor.u32 %v3664_v31, %v3663_v30  ;;  %v333_v12 = vld [vmem:[#allocation3 + $0x68] sm:$0xff]  ;;  %v349_v31 = vld [vmem:[#allocation3 + $0x90] sm:$0xff] }
  0xb5   : > { %v1824_v35 = vor.u32 %v3666_v34, %v3665_v33  ;;  %v1888_v37 = vor.u32 %v3668_v36, %v3667_v1 }
  0xb7   : > { %654 = vmatpush.bf16.msra.mxu0 %v2222_v62  ;;  %2354 = vmatpush.bf16.msra.mxu2 %v2222_v62 }
  0xb8   : > { %743 = vmatpush.bf16.msra.mxu1 %v2230_v63  ;;  %2362 = vmatpush.bf16.msra.mxu3 %v2230_v63  ;;  %v330_v63 = vld [vmem:[#allocation3 + $0xd8] sm:$0xff] }
  0xbb   : > { %655 = vmatpush.bf16.msra.mxu0 %v2221_v52  ;;  %2355 = vmatpush.bf16.msra.mxu2 %v2221_v52 }
  0xbc   : > { %744 = vmatpush.bf16.msra.mxu1 %v2229_v44  ;;  %2363 = vmatpush.bf16.msra.mxu3 %v2229_v44 }
  0xbe   : > { %656 = vmatmul.bf16.vlgmr.msra.gmra.mxu0 %v1764_v5  ;;  %696 = vmatmul.bf16.vlgmr.msra.gmra.mxu2 %v1828_v9 }
  0xbf   : > { %745 = vmatmul.bf16.vlgmr.msra.gmra.mxu1 %v1768_v58  ;;  %785 = vmatmul.bf16.vlgmr.msra.gmra.mxu3 %v1832_v4  ;;  %v346_v4 = vld [vmem:[#allocation3 + $0x40] sm:$0xff] }
  0xce   : > { %661 = vmatmul.bf16.gmra.mxu0 %v1772_v3  ;;  %701 = vmatmul.bf16.gmra.mxu2 %v1836_v7 }
  0xcf   : > { %750 = vmatmul.bf16.gmra.mxu1 %v1776_v49  ;;  %790 = vmatmul.bf16.gmra.mxu3 %v1840_v2  ;;  %v331_v2 = vld [vmem:[#allocation3 + $0x18] sm:$0xff] }
  0xde   : > { %666 = vmatmul.bf16.gmra.mxu0 %v1780_v6  ;;  %706 = vmatmul.bf16.gmra.mxu2 %v1844_v48 }
  0xdf   : > { %755 = vmatmul.bf16.gmra.mxu1 %v1784_v11  ;;  %795 = vmatmul.bf16.gmra.mxu3 %v1848_v15 }
  0xee   : > { %671 = vmatmul.bf16.gmra.mxu0 %v1788_v10  ;;  %711 = vmatmul.bf16.gmra.mxu2 %v1852_v14  ;;  %v347_v14 = vld [vmem:[#allocation3 + $0xc8] sm:$0xff] }
  0xef   : > { %760 = vmatmul.bf16.gmra.mxu1 %v1792_v19  ;;  %800 = vmatmul.bf16.gmra.mxu3 %v1856_v23 }
  0xfe   : > { %676 = vmatmul.bf16.gmra.mxu0 %v1796_v18  ;;  %716 = vmatmul.bf16.gmra.mxu2 %v1860_v21  ;;  %v332_v21 = vld [vmem:[#allocation3 + $0x50] sm:$0xff] }
  0xff   : > { %765 = vmatmul.bf16.gmra.mxu1 %v1800_v22  ;;  %805 = vmatmul.bf16.gmra.mxu3 %v1864_v16 }
 0x10e   : > { %681 = vmatmul.bf16.gmra.mxu0 %v1804_v8  ;;  %721 = vmatmul.bf16.gmra.mxu2 %v1868_v24 }
 0x10f   : > { %770 = vmatmul.bf16.gmra.mxu1 %v1808_v25  ;;  %810 = vmatmul.bf16.gmra.mxu3 %v1872_v17  ;;  %v348_v17 = vld [vmem:[#allocation3 + $0xe0] sm:$0xff] }
 0x11e   : > { %686 = vmatmul.bf16.gmra.mxu0 %v1812_v13  ;;  %726 = vmatmul.bf16.gmra.mxu2 %v1876_v20 }
 0x11f   : > { %775 = vmatmul.bf16.gmra.mxu1 %v1816_v26  ;;  %815 = vmatmul.bf16.gmra.mxu3 %v1880_v27 }
 0x12e   : > { %691 = vmatmul.bf16.gmra.mxu0 %v1820_v29  ;;  %731 = vmatmul.bf16.gmra.mxu2 %v1884_v32 }
 0x12f   : > { %780 = vmatmul.bf16.gmra.mxu1 %v1824_v35  ;;  %820 = vmatmul.bf16.gmra.mxu3 %v1888_v37  ;;  %v334_v35 = vld [vmem:[#allocation3 + $0x30] sm:$0xff] }
 0x13b   : > { %v657_v38 = vpop.f32.mrf.mxu0 }
 0x13c   : > { %v746_v40 = vpop.f32.mrf.mxu1 }
 0x13d   : > { %v747_v41 = vadd.f32 %v746_v40, %v657_v38  ;;  %v350_v40 = vld [vmem:[#allocation3 + $0x70] sm:$0xff] }
 0x13f   : > { %v826_v42 = vadd.f32 %v747_v41, %v328_v39 }
 0x141   : > { %858 = vst [vmem:[#allocation3 + $0xb0] sm:$0xff] %v826_v42  ;;  %v697_v43 = vpop.f32.mrf.mxu2 }
 0x142   : > { %v786_v46 = vpop.f32.mrf.mxu3 }
 0x143   : > { %v787_v47 = vadd.f32 %v786_v46, %v697_v43  ;;  %v659_v50 = vpop.f32.mrf.mxu0 }
 0x144   : > { %v748_v53 = vpop.f32.mrf.mxu1 }
 0x145   : > { %v842_v54 = vadd.f32 %v787_v47, %v344_v45  ;;  %v749_v55 = vadd.f32 %v748_v53, %v659_v50  ;;  %v335_v45 = vld [vmem:[#allocation3 + $0x48] sm:$0xff] }
 0x147   : > { %874 = vst [vmem:[#allocation3 + $0x38] sm:$0xff] %v842_v54  ;;  %v827_v56 = vadd.f32 %v749_v55, %v329_v51  ;;  %v351_v54 = vld [vmem:[#allocation3 + $0xc0] sm:$0xff] }
 0x149   : > { %859 = vst [vmem:[#allocation3] sm:$0xff] %v827_v56  ;;  %v699_v57 = vpop.f32.mrf.mxu2 }
 0x14a   : > { %v788_v61 = vpop.f32.mrf.mxu3 }
 0x14b   : > { %v789_v59 = vadd.f32 %v788_v61, %v699_v57  ;;  %v662_v62 = vpop.f32.mrf.mxu0 }
 0x14c   : > { %v751_v52 = vpop.f32.mrf.mxu1 }
 0x14d   : > { %v843_v44 = vadd.f32 %v789_v59, %v345_v60  ;;  %v752_v5 = vadd.f32 %v751_v52, %v662_v62  ;;  %v336_v60 = vld [vmem:[#allocation3 + $0x80] sm:$0xff] }
 0x14f   : > { %875 = vst [vmem:[#allocation3 + $0x58] sm:$0xff] %v843_v44  ;;  %v828_v9 = vadd.f32 %v752_v5, %v330_v63  ;;  %v352_v44 = vld [vmem:[#allocation3 + $0xa8] sm:$0xff] }
 0x151   : > { %860 = vst [vmem:[#allocation3 + $0xd8] sm:$0xff] %v828_v9  ;;  %v702_v58 = vpop.f32.mrf.mxu2 }
 0x152   : > { %v791_v3 = vpop.f32.mrf.mxu3 }
 0x153   : > { %v792_v7 = vadd.f32 %v791_v3, %v702_v58  ;;  %v664_v49 = vpop.f32.mrf.mxu0 }
 0x154   : > { %v753_v6 = vpop.f32.mrf.mxu1 }
 0x155   : > { %v844_v48 = vadd.f32 %v792_v7, %v346_v4  ;;  %v754_v11 = vadd.f32 %v753_v6, %v664_v49  ;;  %v337_v4 = vld [vmem:[#allocation3 + $0x88] sm:$0xff] }
 0x157   : > { %876 = vst [vmem:[#allocation3 + $0x40] sm:$0xff] %v844_v48  ;;  %v829_v15 = vadd.f32 %v754_v11, %v331_v2  ;;  %v353_v48 = vld [vmem:[#allocation3 + $0xd0] sm:$0xff] }
 0x159   : > { %861 = vst [vmem:[#allocation3 + $0x18] sm:$0xff] %v829_v15  ;;  %v704_v10 = vpop.f32.mrf.mxu2 }
 0x15a   : > { %v793_v19 = vpop.f32.mrf.mxu3 }
 0x15b   : > { %v794_v23 = vadd.f32 %v793_v19, %v704_v10  ;;  %v667_v18 = vpop.f32.mrf.mxu0 }
 0x15c   : > { %v756_v22 = vpop.f32.mrf.mxu1 }
 0x15d   : > { %v845_v16 = vadd.f32 %v794_v23, %v347_v14  ;;  %v757_v8 = vadd.f32 %v756_v22, %v667_v18  ;;  %v338_v14 = vld [vmem:[#allocation3 + $0xe8] sm:$0xff] }
 0x15f   : > { %877 = vst [vmem:[#allocation3 + $0xc8] sm:$0xff] %v845_v16  ;;  %v830_v24 = vadd.f32 %v757_v8, %v332_v21  ;;  %v354_v16 = vld [vmem:[#allocation3 + $0x10] sm:$0xff] }
 0x161   : > { %862 = vst [vmem:[#allocation3 + $0x50] sm:$0xff] %v830_v24  ;;  %v707_v25 = vpop.f32.mrf.mxu2 }
 0x162   : > { %v796_v13 = vpop.f32.mrf.mxu3 }
 0x163   : > { %v797_v20 = vadd.f32 %v796_v13, %v707_v25  ;;  %v669_v26 = vpop.f32.mrf.mxu0 }
 0x164   : > { %v758_v27 = vpop.f32.mrf.mxu1 }
 0x165   : > { %v846_v0 = vadd.f32 %v797_v20, %v348_v17  ;;  %v759_v28 = vadd.f32 %v758_v27, %v669_v26  ;;  %v339_v17 = vld [vmem:[#allocation3 + $0xb8] sm:$0xff] }
 0x167   : > { %878 = vst [vmem:[#allocation3 + $0xe0] sm:$0xff] %v846_v0  ;;  %v831_v29 = vadd.f32 %v759_v28, %v333_v12  ;;  %v355_v0 = vld [vmem:[#allocation3 + $0x28] sm:$0xff] }
 0x169   : > { %863 = vst [vmem:[#allocation3 + $0x68] sm:$0xff] %v831_v29  ;;  %v709_v30 = vpop.f32.mrf.mxu2 }
 0x16a   : > { %v798_v32 = vpop.f32.mrf.mxu3 }
 0x16b   : > { %v799_v33 = vadd.f32 %v798_v32, %v709_v30  ;;  %v672_v34 = vpop.f32.mrf.mxu0 }
 0x16c   : > { %v761_v1 = vpop.f32.mrf.mxu1 }
 0x16d   : > { %v847_v36 = vadd.f32 %v799_v33, %v349_v31  ;;  %v762_v37 = vadd.f32 %v761_v1, %v672_v34  ;;  %v340_v31 = vld [vmem:[#allocation3 + $0x60] sm:$0xff] }
 0x16f   : > { %879 = vst [vmem:[#allocation3 + $0x90] sm:$0xff] %v847_v36  ;;  %v832_v38 = vadd.f32 %v762_v37, %v334_v35  ;;  %v356_v36 = vld [vmem:[#allocation3 + $0xa0] sm:$0xff] }
 0x171   : > { %864 = vst [vmem:[#allocation3 + $0x30] sm:$0xff] %v832_v38  ;;  %v712_v39 = vpop.f32.mrf.mxu2 }
 0x172   : > { %v801_v41 = vpop.f32.mrf.mxu3 }
 0x173   : > { %v802_v42 = vadd.f32 %v801_v41, %v712_v39  ;;  %v674_v43 = vpop.f32.mrf.mxu0 }
 0x174   : > { %v763_v46 = vpop.f32.mrf.mxu1 }
 0x175   : > { %v848_v47 = vadd.f32 %v802_v42, %v350_v40  ;;  %v764_v50 = vadd.f32 %v763_v46, %v674_v43  ;;  %v341_v40 = vld [vmem:[#allocation3 + $0xf0] sm:$0xff] }
 0x177   : > { %880 = vst [vmem:[#allocation3 + $0x70] sm:$0xff] %v848_v47  ;;  %v833_v51 = vadd.f32 %v764_v50, %v335_v45  ;;  %v357_v47 = vld [vmem:[#allocation3 + $0xf8] sm:$0xff] }
 0x179   : > { %865 = vst [vmem:[#allocation3 + $0x48] sm:$0xff] %v833_v51  ;;  %v714_v53 = vpop.f32.mrf.mxu2 }
 0x17a   : > { %v803_v55 = vpop.f32.mrf.mxu3 }
 0x17b   : > { %v804_v56 = vadd.f32 %v803_v55, %v714_v53  ;;  %v677_v57 = vpop.f32.mrf.mxu0 }
 0x17c   : > { %v766_v61 = vpop.f32.mrf.mxu1 }
 0x17d   : > { %v849_v59 = vadd.f32 %v804_v56, %v351_v54  ;;  %v767_v62 = vadd.f32 %v766_v61, %v677_v57  ;;  %v342_v54 = vld [vmem:[#allocation3 + $0x8] sm:$0xff] }
 0x17f   : > { %881 = vst [vmem:[#allocation3 + $0xc0] sm:$0xff] %v849_v59  ;;  %v834_v63 = vadd.f32 %v767_v62, %v336_v60  ;;  %v358_v59 = vld [vmem:[#allocation3 + $0x20] sm:$0xff] }
 0x181   : > { %866 = vst [vmem:[#allocation3 + $0x80] sm:$0xff] %v834_v63  ;;  %v717_v52 = vpop.f32.mrf.mxu2 }
 0x182   : > { %v806_v5 = vpop.f32.mrf.mxu3 }
 0x183   : > { %v807_v9 = vadd.f32 %v806_v5, %v717_v52  ;;  %v679_v58 = vpop.f32.mrf.mxu0 }
 0x184   : > { %v768_v3 = vpop.f32.mrf.mxu1 }
 0x185   : > { %v850_v7 = vadd.f32 %v807_v9, %v352_v44  ;;  %v769_v49 = vadd.f32 %v768_v3, %v679_v58  ;;  %v343_v44 = vld [vmem:[#allocation3 + $0x78] sm:$0xff] }
 0x187   : > { %882 = vst [vmem:[#allocation3 + $0xa8] sm:$0xff] %v850_v7  ;;  %v835_v2 = vadd.f32 %v769_v49, %v337_v4  ;;  %v359_v7 = vld [vmem:[#allocation3 + $0x98] sm:$0xff] }
 0x189   : > { %867 = vst [vmem:[#allocation3 + $0x88] sm:$0xff] %v835_v2  ;;  %v719_v6 = vpop.f32.mrf.mxu2 }
 0x18a   : > { %v808_v11 = vpop.f32.mrf.mxu3 }
 0x18b   : > { %v809_v15 = vadd.f32 %v808_v11, %v719_v6  ;;  %v682_v10 = vpop.f32.mrf.mxu0 }
 0x18c   : > { %v771_v19 = vpop.f32.mrf.mxu1 }
 0x18d   : > { %v851_v23 = vadd.f32 %v809_v15, %v353_v48  ;;  %v772_v18 = vadd.f32 %v771_v19, %v682_v10 }
 0x18f   : > { %883 = vst [vmem:[#allocation3 + $0xd0] sm:$0xff] %v851_v23  ;;  %v836_v21 = vadd.f32 %v772_v18, %v338_v14 }
 0x191   : > { %868 = vst [vmem:[#allocation3 + $0xe8] sm:$0xff] %v836_v21  ;;  %v722_v22 = vpop.f32.mrf.mxu2 }
 0x192   : > { %v811_v8 = vpop.f32.mrf.mxu3 }
 0x193   : > { %v812_v24 = vadd.f32 %v811_v8, %v722_v22  ;;  %v684_v25 = vpop.f32.mrf.mxu0 }
 0x194   : > { %v773_v13 = vpop.f32.mrf.mxu1 }
 0x195   : > { %v852_v20 = vadd.f32 %v812_v24, %v354_v16  ;;  %v774_v26 = vadd.f32 %v773_v13, %v684_v25 }
 0x197   : > { %884 = vst [vmem:[#allocation3 + $0x10] sm:$0xff] %v852_v20  ;;  %v837_v12 = vadd.f32 %v774_v26, %v339_v17 }
 0x199   : > { %869 = vst [vmem:[#allocation3 + $0xb8] sm:$0xff] %v837_v12  ;;  %v724_v27 = vpop.f32.mrf.mxu2 }
 0x19a   : > { %v813_v28 = vpop.f32.mrf.mxu3 }
 0x19b   : > { %v814_v29 = vadd.f32 %v813_v28, %v724_v27  ;;  %v687_v30 = vpop.f32.mrf.mxu0 }
 0x19c   : > { %v776_v32 = vpop.f32.mrf.mxu1 }
 0x19d   : > { %v853_v33 = vadd.f32 %v814_v29, %v355_v0  ;;  %v777_v34 = vadd.f32 %v776_v32, %v687_v30 }
 0x19f   : > { %885 = vst [vmem:[#allocation3 + $0x28] sm:$0xff] %v853_v33  ;;  %v838_v35 = vadd.f32 %v777_v34, %v340_v31 }
 0x1a1   : > { %870 = vst [vmem:[#allocation3 + $0x60] sm:$0xff] %v838_v35  ;;  %v727_v1 = vpop.f32.mrf.mxu2 }
 0x1a2   : > { %v816_v37 = vpop.f32.mrf.mxu3 }
 0x1a3   : > { %v817_v38 = vadd.f32 %v816_v37, %v727_v1  ;;  %v689_v39 = vpop.f32.mrf.mxu0 }
 0x1a4   : > { %v778_v41 = vpop.f32.mrf.mxu1 }
 0x1a5   : > { %v854_v42 = vadd.f32 %v817_v38, %v356_v36  ;;  %v779_v43 = vadd.f32 %v778_v41, %v689_v39 }
 0x1a7   : > { %886 = vst [vmem:[#allocation3 + $0xa0] sm:$0xff] %v854_v42  ;;  %v839_v45 = vadd.f32 %v779_v43, %v341_v40 }
 0x1a9   : > { %871 = vst [vmem:[#allocation3 + $0xf0] sm:$0xff] %v839_v45  ;;  %v729_v46 = vpop.f32.mrf.mxu2 }
 0x1aa   : > { %v818_v50 = vpop.f32.mrf.mxu3 }
 0x1ab   : > { %v819_v51 = vadd.f32 %v818_v50, %v729_v46  ;;  %v692_v53 = vpop.f32.mrf.mxu0 }
 0x1ac   : > { %v781_v55 = vpop.f32.mrf.mxu1 }
 0x1ad   : > { %v855_v56 = vadd.f32 %v819_v51, %v357_v47  ;;  %v782_v57 = vadd.f32 %v781_v55, %v692_v53 }
 0x1af   : > { %887 = vst [vmem:[#allocation3 + $0xf8] sm:$0xff] %v855_v56  ;;  %v840_v60 = vadd.f32 %v782_v57, %v342_v54 }
 0x1b1   : > { %872 = vst [vmem:[#allocation3 + $0x8] sm:$0xff] %v840_v60  ;;  %v732_v61 = vpop.f32.mrf.mxu2 }
 0x1b2   : > { %v821_v62 = vpop.f32.mrf.mxu3 }
 0x1b3   : > { %v822_v63 = vadd.f32 %v821_v62, %v732_v61  ;;  %v694_v52 = vpop.f32.mrf.mxu0 }
 0x1b4   : > { %v783_v5 = vpop.f32.mrf.mxu1 }
 0x1b5   : > { %v856_v9 = vadd.f32 %v822_v63, %v358_v59  ;;  %v784_v58 = vadd.f32 %v783_v5, %v694_v52 }
 0x1b7   : > { %888 = vst [vmem:[#allocation3 + $0x20] sm:$0xff] %v856_v9  ;;  %v841_v4 = vadd.f32 %v784_v58, %v343_v44 }
 0x1b9   : > { %873 = vst [vmem:[#allocation3 + $0x78] sm:$0xff] %v841_v4  ;;  %v734_v3 = vpop.f32.mrf.mxu2 }
 0x1ba   : > { %v823_v49 = vpop.f32.mrf.mxu3 }
 0x1bb   : > { %v824_v2 = vadd.f32 %v823_v49, %v734_v3 }
 0x1bd   : > { %v857_v6 = vadd.f32 %v824_v2, %v359_v7 }
 0x1bf   : > { %889 = vst [vmem:[#allocation3 + $0x98] sm:$0xff] %v857_v6 }
 0x1c0 PF: > { %p1953_p5 = scmp.le.s32.totalorder %s2669_s15, 0 }
 0x1c1   : > { %s894_s6 = sadd.s32 (!%p1953_p5), 1, %s2669_s15 }
 0x1c2   : > { %893 = sbr.rel (%p1953_p5) target bundleno = 745 (0x2e9), region = 48  ;;  %s895_s8 = sand.u32 (!%p1953_p5), 1, %s894_s6 }
 0x1c3   : > { %s1954_s25 = sshll.u32 (!%p1953_p5), %s895_s8, 8 }
 0x1c4   : > { %s930_s7 = sshra.s32 (!%p1953_p5), %s1954_s25, 3 }
 0x1c5   : > { %s1955_s20 = sshll.u32 (!%p1953_p5), %s930_s7, 2 }
 0x1c6   : > { %s3314_s21 = scalar_lea.vmem (!%p1953_p5), [#allocation2], %s1955_s20 }
 0x1c7   : > { %v2244_v48 = vld [vmem:[%s3314_s21 + $0x38] sm:$0xff]  ;;  %v2243_v15 = vld [vmem:[%s3314_s21 + $0x30] sm:$0xff]  ;;  %v2242_v14 = vld [vmem:[%s3314_s21 + $0x28] sm:$0xff] }
 0x1c8   : > { %v2252_v11 = vld [vmem:[%s3314_s21 + $0x78] sm:$0xff]  ;;  %1222 = vmatpush.bf16.msra.mxu0 %v2244_v48  ;;  %2364 = vmatpush.bf16.msra.mxu2 %v2244_v48  ;;  %v2251_v10 = vld [vmem:[%s3314_s21 + $0x70] sm:$0xff]  ;;  %v2250_v19 = vld [vmem:[%s3314_s21 + $0x68] sm:$0xff] }
 0x1c9   : > { %1311 = vmatpush.bf16.msra.mxu1 %v2252_v11  ;;  %2372 = vmatpush.bf16.msra.mxu3 %v2252_v11  ;;  %v2241_v23 = vld [vmem:[%s3314_s21 + $0x20] sm:$0xff]  ;;  %v2240_v21 = vld [vmem:[%s3314_s21 + $0x18] sm:$0xff]  ;;  %v2239_v16 = vld [vmem:[%s3314_s21 + $0x10] sm:$0xff] }
 0x1ca   : > { %v2249_v18 = vld [vmem:[%s3314_s21 + $0x60] sm:$0xff]  ;;  %v2248_v22 = vld [vmem:[%s3314_s21 + $0x58] sm:$0xff]  ;;  %v2247_v8 = vld [vmem:[%s3314_s21 + $0x50] sm:$0xff] }
 0x1cb   : > { %v2238_v24 = vld [vmem:[%s3314_s21 + $0x8] sm:$0xff]  ;;  %v2237_v17 = vld [vmem:[%s3314_s21] sm:$0xff]  ;;  %v3670_v26 = vld [vmem:[#allocation19_spill] sm:$0xff] }
 0x1cc   : > { %1223 = vmatpush.bf16.msra.mxu0 %v2243_v15  ;;  %2365 = vmatpush.bf16.msra.mxu2 %v2243_v15  ;;  %v2246_v25 = vld [vmem:[%s3314_s21 + $0x48] sm:$0xff]  ;;  %v2245_v13 = vld [vmem:[%s3314_s21 + $0x40] sm:$0xff]  ;;  %v3672_v0 = vld [vmem:[#allocation55_spill] sm:$0xff] }
 0x1cd   : > { %1312 = vmatpush.bf16.msra.mxu1 %v2251_v10  ;;  %2373 = vmatpush.bf16.msra.mxu3 %v2251_v10  ;;  %v3669_v20 = vld [vmem:[#allocation17_spill] sm:$0xff]  ;;  %v3673_v29 = vld [vmem:[#allocation18_spill] sm:$0xff]  ;;  %v3674_v30 = vld [vmem:[#allocation16_spill] sm:$0xff] }
 0x1ce   : > { %v1959_v12 = vor.u32 %v3670_v26, %v3669_v20  ;;  %v3671_v27 = vld [vmem:[#allocation53_spill] sm:$0xff]  ;;  %v1963_v31 = vor.u32 %v3674_v30, %v3673_v29  ;;  %v3675_v32 = vld [vmem:[#allocation54_spill] sm:$0xff]  ;;  %v3676_v33 = vld [vmem:[#allocation52_spill] sm:$0xff] }
 0x1cf   : > { %v2023_v28 = vor.u32 %v3672_v0, %v3671_v27  ;;  %v2027_v34 = vor.u32 %v3676_v33, %v3675_v32  ;;  %v3677_v35 = vld [vmem:[#allocation21_spill] sm:$0xff]  ;;  %v3678_v1 = vld [vmem:[#allocation23_spill] sm:$0xff]  ;;  %v3681_v40 = vld [vmem:[#allocation22_spill] sm:$0xff] }
 0x1d0   : > { %1224 = vmatpush.bf16.msra.mxu0 %v2242_v14  ;;  %2366 = vmatpush.bf16.msra.mxu2 %v2242_v14  ;;  %v1967_v36 = vor.u32 %v3678_v1, %v3677_v35  ;;  %v3679_v37 = vld [vmem:[#allocation57_spill] sm:$0xff]  ;;  %v3680_v38 = vld [vmem:[#allocation59_spill] sm:$0xff]  ;;  %v3682_v41 = vld [vmem:[#allocation20_spill] sm:$0xff] }
 0x1d1   : > { %1313 = vmatpush.bf16.msra.mxu1 %v2250_v19  ;;  %2374 = vmatpush.bf16.msra.mxu3 %v2250_v19  ;;  %v2031_v39 = vor.u32 %v3680_v38, %v3679_v37  ;;  %v1971_v42 = vor.u32 %v3682_v41, %v3681_v40  ;;  %v3683_v43 = vld [vmem:[#allocation58_spill] sm:$0xff]  ;;  %v3684_v45 = vld [vmem:[#allocation56_spill] sm:$0xff]  ;;  %v3685_v47 = vld [vmem:[#allocation25_spill] sm:$0xff] }
 0x1d2   : > { %v2035_v46 = vor.u32 %v3684_v45, %v3683_v43  ;;  %v3686_v50 = vld [vmem:[#allocation27_spill] sm:$0xff]  ;;  %v3687_v53 = vld [vmem:[#allocation61_spill] sm:$0xff]  ;;  %v3689_v56 = vld [vmem:[#allocation26_spill] sm:$0xff] }
 0x1d3   : > { %v1975_v51 = vor.u32 %v3686_v50, %v3685_v47  ;;  %v3688_v54 = vld [vmem:[#allocation63_spill] sm:$0xff]  ;;  %v3690_v57 = vld [vmem:[#allocation24_spill] sm:$0xff]  ;;  %v3691_v61 = vld [vmem:[#allocation62_spill] sm:$0xff] }
 0x1d4   : > { %1225 = vmatpush.bf16.msra.mxu0 %v2241_v23  ;;  %2367 = vmatpush.bf16.msra.mxu2 %v2241_v23  ;;  %v2039_v55 = vor.u32 %v3688_v54, %v3687_v53  ;;  %v1979_v60 = vor.u32 %v3690_v57, %v3689_v56  ;;  %v3692_v59 = vld [vmem:[#allocation60_spill] sm:$0xff]  ;;  %v3693_v63 = vld [vmem:[#allocation29_spill] sm:$0xff]  ;;  %v3694_v52 = vld [vmem:[#allocation31_spill] sm:$0xff] }
 0x1d5   : > { %1314 = vmatpush.bf16.msra.mxu1 %v2249_v18  ;;  %2375 = vmatpush.bf16.msra.mxu3 %v2249_v18  ;;  %v2043_v62 = vor.u32 %v3692_v59, %v3691_v61  ;;  %v1983_v44 = vor.u32 %v3694_v52, %v3693_v63  ;;  %v3695_v5 = vld [vmem:[#allocation65_spill] sm:$0xff]  ;;  %v3696_v9 = vld [vmem:[#allocation67_spill] sm:$0xff]  ;;  %v3697_v4 = vld [vmem:[#allocation30_spill] sm:$0xff] }
 0x1d6   : > { %v2047_v58 = vor.u32 %v3696_v9, %v3695_v5  ;;  %v3698_v3 = vld [vmem:[#allocation28_spill] sm:$0xff]  ;;  %v3699_v49 = vld [vmem:[#allocation66_spill] sm:$0xff]  ;;  %v3701_v48 = vld [vmem:[#allocation33_spill] sm:$0xff] }
 0x1d7   : > { %v1987_v7 = vor.u32 %v3698_v3, %v3697_v4  ;;  %v3700_v2 = vld [vmem:[#allocation64_spill] sm:$0xff]  ;;  %v3702_v11 = vld [vmem:[#allocation35_spill] sm:$0xff]  ;;  %v3703_v10 = vld [vmem:[#allocation69_spill] sm:$0xff] }
 0x1d8   : > { %1226 = vmatpush.bf16.msra.mxu0 %v2240_v21  ;;  %2368 = vmatpush.bf16.msra.mxu2 %v2240_v21  ;;  %v2051_v6 = vor.u32 %v3700_v2, %v3699_v49  ;;  %v1991_v15 = vor.u32 %v3702_v11, %v3701_v48  ;;  %v3704_v14 = vld [vmem:[#allocation71_spill] sm:$0xff]  ;;  %v3705_v23 = vld [vmem:[#allocation34_spill] sm:$0xff]  ;;  %v3706_v18 = vld [vmem:[#allocation32_spill] sm:$0xff] }
 0x1d9   : > { %1315 = vmatpush.bf16.msra.mxu1 %v2248_v22  ;;  %2376 = vmatpush.bf16.msra.mxu3 %v2248_v22  ;;  %v2055_v19 = vor.u32 %v3704_v14, %v3703_v10  ;;  %v1995_v21 = vor.u32 %v3706_v18, %v3705_v23  ;;  %v3707_v22 = vld [vmem:[#allocation70_spill] sm:$0xff]  ;;  %v3712_v20 = vld [vmem:[#allocation75_spill] sm:$0xff]  ;;  %v3714_v27 = vld [vmem:[#allocation36_spill] sm:$0xff] }
 0x1da   : > { %v3716_v29 = vld [vmem:[#allocation72_spill] sm:$0xff]  ;;  %v3718_v32 = vld [vmem:[#allocation43_spill] sm:$0xff]  ;;  %v3726_v43 = vld [vmem:[#allocation49_spill] sm:$0xff] }
 0x1db   : > { %v3720_v35 = vld [vmem:[#allocation80_spill] sm:$0xff]  ;;  %v3728_v47 = vld [vmem:[#allocation86_spill] sm:$0xff]  ;;  %v3732_v56 = vld [vmem:[#allocation81_spill] sm:$0xff] }
 0x1dc   : > { %1227 = vmatpush.bf16.msra.mxu0 %v2239_v16  ;;  %2369 = vmatpush.bf16.msra.mxu2 %v2239_v16  ;;  %v3708_v16 = vld [vmem:[#allocation68_spill] sm:$0xff]  ;;  %v898_v61 = vld [vmem:[#allocation3 + $0xb0] sm:$0xff]  ;;  %v915_v48 = vld [vmem:[#allocation3 + $0x58] sm:$0xff] }
 0x1dd   : > { %1316 = vmatpush.bf16.msra.mxu1 %v2247_v8  ;;  %2377 = vmatpush.bf16.msra.mxu3 %v2247_v8  ;;  %v2059_v8 = vor.u32 %v3708_v16, %v3707_v22  ;;  %v3722_v37 = vld [vmem:[#allocation40_spill] sm:$0xff]  ;;  %v900_v14 = vld [vmem:[#allocation3 + $0xd8] sm:$0xff] }
 0x1de   : > { %v3724_v40 = vld [vmem:[#allocation76_spill] sm:$0xff] }
 0x1df   : > { %v3730_v53 = vld [vmem:[#allocation44_spill] sm:$0xff] }
 0x1e0   : > { %1228 = vmatpush.bf16.msra.mxu0 %v2238_v24  ;;  %2370 = vmatpush.bf16.msra.mxu2 %v2238_v24  ;;  %v3709_v24 = vld [vmem:[#allocation37_spill] sm:$0xff]  ;;  %v899_v4 = vld [vmem:[#allocation3] sm:$0xff] }
 0x1e1   : > { %1317 = vmatpush.bf16.msra.mxu1 %v2246_v25  ;;  %2378 = vmatpush.bf16.msra.mxu3 %v2246_v25  ;;  %v3710_v25 = vld [vmem:[#allocation39_spill] sm:$0xff]  ;;  %v916_v16 = vld [vmem:[#allocation3 + $0x40] sm:$0xff] }
 0x1e4   : > { %1229 = vmatpush.bf16.msra.mxu0 %v2237_v17  ;;  %2371 = vmatpush.bf16.msra.mxu2 %v2237_v17  ;;  %v1999_v17 = vor.u32 %v3710_v25, %v3709_v24 }
 0x1e5   : > { %1318 = vmatpush.bf16.msra.mxu1 %v2245_v13  ;;  %2379 = vmatpush.bf16.msra.mxu3 %v2245_v13  ;;  %v3711_v13 = vld [vmem:[#allocation73_spill] sm:$0xff] }
 0x1e6   : > { %v2063_v26 = vor.u32 %v3712_v20, %v3711_v13 }
 0x1e7   : > { %1230 = vmatmul.bf16.vlgmr.msra.gmra.mxu0 %v1959_v12  ;;  %1270 = vmatmul.bf16.vlgmr.msra.gmra.mxu2 %v2023_v28  ;;  %v3713_v12 = vld [vmem:[#allocation38_spill] sm:$0xff] }
 0x1e8   : > { %1319 = vmatmul.bf16.vlgmr.msra.gmra.mxu1 %v1963_v31  ;;  %1359 = vmatmul.bf16.vlgmr.msra.gmra.mxu3 %v2027_v34  ;;  %v2003_v0 = vor.u32 %v3714_v27, %v3713_v12  ;;  %v3715_v28 = vld [vmem:[#allocation74_spill] sm:$0xff]  ;;  %v3717_v31 = vld [vmem:[#allocation41_spill] sm:$0xff] }
 0x1e9   : > { %v2067_v30 = vor.u32 %v3716_v29, %v3715_v28  ;;  %v2007_v33 = vor.u32 %v3718_v32, %v3717_v31  ;;  %v3719_v34 = vld [vmem:[#allocation77_spill] sm:$0xff]  ;;  %v902_v31 = vld [vmem:[#allocation3 + $0x50] sm:$0xff] }
 0x1ea   : > { %v2071_v1 = vor.u32 %v3720_v35, %v3719_v34 }
 0x1f7   : > { %1235 = vmatmul.bf16.gmra.mxu0 %v1967_v36  ;;  %1275 = vmatmul.bf16.gmra.mxu2 %v2031_v39  ;;  %v3721_v36 = vld [vmem:[#allocation42_spill] sm:$0xff]  ;;  %v3723_v39 = vld [vmem:[#allocation79_spill] sm:$0xff] }
 0x1f8   : > { %1324 = vmatmul.bf16.gmra.mxu1 %v1971_v42  ;;  %1364 = vmatmul.bf16.gmra.mxu3 %v2035_v46  ;;  %v2011_v38 = vor.u32 %v3722_v37, %v3721_v36  ;;  %v2075_v41 = vor.u32 %v3724_v40, %v3723_v39  ;;  %v3725_v42 = vld [vmem:[#allocation45_spill] sm:$0xff]  ;;  %v3727_v46 = vld [vmem:[#allocation82_spill] sm:$0xff]  ;;  %v918_v36 = vld [vmem:[#allocation3 + $0xe0] sm:$0xff] }
 0x1f9   : > { %v2015_v45 = vor.u32 %v3726_v43, %v3725_v42  ;;  %v2079_v50 = vor.u32 %v3728_v47, %v3727_v46  ;;  %v903_v40 = vld [vmem:[#allocation3 + $0x68] sm:$0xff]  ;;  %v919_v47 = vld [vmem:[#allocation3 + $0x90] sm:$0xff] }
 0x207   : > { %1240 = vmatmul.bf16.gmra.mxu0 %v1975_v51  ;;  %1280 = vmatmul.bf16.gmra.mxu2 %v2039_v55  ;;  %v3729_v51 = vld [vmem:[#allocation48_spill] sm:$0xff]  ;;  %v3731_v55 = vld [vmem:[#allocation85_spill] sm:$0xff] }
 0x208   : > { %1329 = vmatmul.bf16.gmra.mxu1 %v1979_v60  ;;  %1369 = vmatmul.bf16.gmra.mxu3 %v2043_v62  ;;  %v2019_v54 = vor.u32 %v3730_v53, %v3729_v51  ;;  %v2083_v57 = vor.u32 %v3732_v56, %v3731_v55 }
 0x217   : > { %1245 = vmatmul.bf16.gmra.mxu0 %v1983_v44  ;;  %1285 = vmatmul.bf16.gmra.mxu2 %v2047_v58  ;;  %v914_v44 = vld [vmem:[#allocation3 + $0x38] sm:$0xff] }
 0x218   : > { %1334 = vmatmul.bf16.gmra.mxu1 %v1987_v7  ;;  %1374 = vmatmul.bf16.gmra.mxu3 %v2051_v6 }
 0x227   : > { %1250 = vmatmul.bf16.gmra.mxu0 %v1991_v15  ;;  %1290 = vmatmul.bf16.gmra.mxu2 %v2055_v19 }
 0x228   : > { %1339 = vmatmul.bf16.gmra.mxu1 %v1995_v21  ;;  %1379 = vmatmul.bf16.gmra.mxu3 %v2059_v8 }
 0x237   : > { %1255 = vmatmul.bf16.gmra.mxu0 %v1999_v17  ;;  %1295 = vmatmul.bf16.gmra.mxu2 %v2063_v26  ;;  %v901_v17 = vld [vmem:[#allocation3 + $0x18] sm:$0xff] }
 0x238   : > { %1344 = vmatmul.bf16.gmra.mxu1 %v2003_v0  ;;  %1384 = vmatmul.bf16.gmra.mxu3 %v2067_v30  ;;  %v917_v0 = vld [vmem:[#allocation3 + $0xc8] sm:$0xff] }
 0x247   : > { %1260 = vmatmul.bf16.gmra.mxu0 %v2007_v33  ;;  %1300 = vmatmul.bf16.gmra.mxu2 %v2071_v1 }
 0x248   : > { %1349 = vmatmul.bf16.gmra.mxu1 %v2011_v38  ;;  %1389 = vmatmul.bf16.gmra.mxu3 %v2075_v41 }
 0x257   : > { %1265 = vmatmul.bf16.gmra.mxu0 %v2015_v45  ;;  %1305 = vmatmul.bf16.gmra.mxu2 %v2079_v50 }
 0x258   : > { %1354 = vmatmul.bf16.gmra.mxu1 %v2019_v54  ;;  %1394 = vmatmul.bf16.gmra.mxu3 %v2083_v57  ;;  %v904_v54 = vld [vmem:[#allocation3 + $0x30] sm:$0xff] }
 0x264   : > { %v1231_v60 = vpop.f32.mrf.mxu0 }
 0x265   : > { %v1320_v59 = vpop.f32.mrf.mxu1 }
 0x266   : > { %v1321_v62 = vadd.f32 %v1320_v59, %v1231_v60  ;;  %v920_v59 = vld [vmem:[#allocation3 + $0x70] sm:$0xff] }
 0x268   : > { %v1400_v63 = vadd.f32 %v1321_v62, %v898_v61 }
 0x26a   : > { %1432 = vst [vmem:[#allocation3 + $0xb0] sm:$0xff] %v1400_v63  ;;  %v1271_v52 = vpop.f32.mrf.mxu2 }
 0x26b   : > { %v1360_v5 = vpop.f32.mrf.mxu3 }
 0x26c   : > { %v1361_v9 = vadd.f32 %v1360_v5, %v1271_v52  ;;  %v1233_v58 = vpop.f32.mrf.mxu0 }
 0x26d   : > { %v1322_v3 = vpop.f32.mrf.mxu1 }
 0x26e   : > { %v1416_v7 = vadd.f32 %v1361_v9, %v914_v44  ;;  %v1323_v49 = vadd.f32 %v1322_v3, %v1233_v58  ;;  %v905_v44 = vld [vmem:[#allocation3 + $0x48] sm:$0xff] }
 0x270   : > { %1448 = vst [vmem:[#allocation3 + $0x38] sm:$0xff] %v1416_v7  ;;  %v1401_v2 = vadd.f32 %v1323_v49, %v899_v4  ;;  %v921_v7 = vld [vmem:[#allocation3 + $0xc0] sm:$0xff] }
 0x272   : > { %1433 = vst [vmem:[#allocation3] sm:$0xff] %v1401_v2  ;;  %v1273_v6 = vpop.f32.mrf.mxu2 }
 0x273   : > { %v1362_v11 = vpop.f32.mrf.mxu3 }
 0x274   : > { %v1363_v15 = vadd.f32 %v1362_v11, %v1273_v6  ;;  %v1236_v10 = vpop.f32.mrf.mxu0 }
 0x275   : > { %v1325_v19 = vpop.f32.mrf.mxu1 }
 0x276   : > { %v1417_v23 = vadd.f32 %v1363_v15, %v915_v48  ;;  %v1326_v18 = vadd.f32 %v1325_v19, %v1236_v10  ;;  %v906_v48 = vld [vmem:[#allocation3 + $0x80] sm:$0xff] }
 0x278   : > { %1449 = vst [vmem:[#allocation3 + $0x58] sm:$0xff] %v1417_v23  ;;  %v1402_v21 = vadd.f32 %v1326_v18, %v900_v14  ;;  %v922_v23 = vld [vmem:[#allocation3 + $0xa8] sm:$0xff] }
 0x27a   : > { %1434 = vst [vmem:[#allocation3 + $0xd8] sm:$0xff] %v1402_v21  ;;  %v1276_v22 = vpop.f32.mrf.mxu2 }
 0x27b   : > { %v1365_v8 = vpop.f32.mrf.mxu3 }
 0x27c   : > { %v1366_v24 = vadd.f32 %v1365_v8, %v1276_v22  ;;  %v1238_v25 = vpop.f32.mrf.mxu0 }
 0x27d   : > { %v1327_v13 = vpop.f32.mrf.mxu1 }
 0x27e   : > { %v1418_v20 = vadd.f32 %v1366_v24, %v916_v16  ;;  %v1328_v26 = vadd.f32 %v1327_v13, %v1238_v25  ;;  %v907_v16 = vld [vmem:[#allocation3 + $0x88] sm:$0xff] }
 0x280   : > { %1450 = vst [vmem:[#allocation3 + $0x40] sm:$0xff] %v1418_v20  ;;  %v1403_v12 = vadd.f32 %v1328_v26, %v901_v17  ;;  %v923_v20 = vld [vmem:[#allocation3 + $0xd0] sm:$0xff] }
 0x282   : > { %1435 = vst [vmem:[#allocation3 + $0x18] sm:$0xff] %v1403_v12  ;;  %v1278_v27 = vpop.f32.mrf.mxu2 }
 0x283   : > { %v1367_v28 = vpop.f32.mrf.mxu3 }
 0x284   : > { %v1368_v29 = vadd.f32 %v1367_v28, %v1278_v27  ;;  %v1241_v30 = vpop.f32.mrf.mxu0 }
 0x285   : > { %v1330_v32 = vpop.f32.mrf.mxu1 }
 0x286   : > { %v1419_v33 = vadd.f32 %v1368_v29, %v917_v0  ;;  %v1331_v34 = vadd.f32 %v1330_v32, %v1241_v30  ;;  %v908_v0 = vld [vmem:[#allocation3 + $0xe8] sm:$0xff] }
 0x288   : > { %1451 = vst [vmem:[#allocation3 + $0xc8] sm:$0xff] %v1419_v33  ;;  %v1404_v35 = vadd.f32 %v1331_v34, %v902_v31  ;;  %v924_v33 = vld [vmem:[#allocation3 + $0x10] sm:$0xff] }
 0x28a   : > { %1436 = vst [vmem:[#allocation3 + $0x50] sm:$0xff] %v1404_v35  ;;  %v1281_v1 = vpop.f32.mrf.mxu2 }
 0x28b   : > { %v1370_v37 = vpop.f32.mrf.mxu3 }
 0x28c   : > { %v1371_v38 = vadd.f32 %v1370_v37, %v1281_v1  ;;  %v1243_v39 = vpop.f32.mrf.mxu0 }
 0x28d   : > { %v1332_v41 = vpop.f32.mrf.mxu1 }
 0x28e   : > { %v1420_v42 = vadd.f32 %v1371_v38, %v918_v36  ;;  %v1333_v43 = vadd.f32 %v1332_v41, %v1243_v39  ;;  %v909_v36 = vld [vmem:[#allocation3 + $0xb8] sm:$0xff] }
 0x290   : > { %1452 = vst [vmem:[#allocation3 + $0xe0] sm:$0xff] %v1420_v42  ;;  %v1405_v45 = vadd.f32 %v1333_v43, %v903_v40  ;;  %v925_v42 = vld [vmem:[#allocation3 + $0x28] sm:$0xff] }
 0x292   : > { %1437 = vst [vmem:[#allocation3 + $0x68] sm:$0xff] %v1405_v45  ;;  %v1283_v46 = vpop.f32.mrf.mxu2 }
 0x293   : > { %v1372_v50 = vpop.f32.mrf.mxu3 }
 0x294   : > { %v1373_v51 = vadd.f32 %v1372_v50, %v1283_v46  ;;  %v1246_v53 = vpop.f32.mrf.mxu0 }
 0x295   : > { %v1335_v55 = vpop.f32.mrf.mxu1 }
 0x296   : > { %v1421_v56 = vadd.f32 %v1373_v51, %v919_v47  ;;  %v1336_v57 = vadd.f32 %v1335_v55, %v1246_v53  ;;  %v910_v47 = vld [vmem:[#allocation3 + $0x60] sm:$0xff] }
 0x298   : > { %1453 = vst [vmem:[#allocation3 + $0x90] sm:$0xff] %v1421_v56  ;;  %v1406_v60 = vadd.f32 %v1336_v57, %v904_v54  ;;  %v926_v56 = vld [vmem:[#allocation3 + $0xa0] sm:$0xff] }
 0x29a   : > { %1438 = vst [vmem:[#allocation3 + $0x30] sm:$0xff] %v1406_v60  ;;  %v1286_v61 = vpop.f32.mrf.mxu2 }
 0x29b   : > { %v1375_v62 = vpop.f32.mrf.mxu3 }
 0x29c   : > { %v1376_v63 = vadd.f32 %v1375_v62, %v1286_v61  ;;  %v1248_v52 = vpop.f32.mrf.mxu0 }
 0x29d   : > { %v1337_v5 = vpop.f32.mrf.mxu1 }
 0x29e   : > { %v1422_v9 = vadd.f32 %v1376_v63, %v920_v59  ;;  %v1338_v58 = vadd.f32 %v1337_v5, %v1248_v52  ;;  %v911_v59 = vld [vmem:[#allocation3 + $0xf0] sm:$0xff] }
 0x2a0   : > { %1454 = vst [vmem:[#allocation3 + $0x70] sm:$0xff] %v1422_v9  ;;  %v1407_v4 = vadd.f32 %v1338_v58, %v905_v44  ;;  %v927_v9 = vld [vmem:[#allocation3 + $0xf8] sm:$0xff] }
 0x2a2   : > { %1439 = vst [vmem:[#allocation3 + $0x48] sm:$0xff] %v1407_v4  ;;  %v1288_v3 = vpop.f32.mrf.mxu2 }
 0x2a3   : > { %v1377_v49 = vpop.f32.mrf.mxu3 }
 0x2a4   : > { %v1378_v2 = vadd.f32 %v1377_v49, %v1288_v3  ;;  %v1251_v6 = vpop.f32.mrf.mxu0 }
 0x2a5   : > { %v1340_v11 = vpop.f32.mrf.mxu1 }
 0x2a6   : > { %v1423_v15 = vadd.f32 %v1378_v2, %v921_v7  ;;  %v1341_v10 = vadd.f32 %v1340_v11, %v1251_v6  ;;  %v912_v7 = vld [vmem:[#allocation3 + $0x8] sm:$0xff] }
 0x2a8   : > { %1455 = vst [vmem:[#allocation3 + $0xc0] sm:$0xff] %v1423_v15  ;;  %v1408_v14 = vadd.f32 %v1341_v10, %v906_v48  ;;  %v928_v15 = vld [vmem:[#allocation3 + $0x20] sm:$0xff] }
 0x2aa   : > { %1440 = vst [vmem:[#allocation3 + $0x80] sm:$0xff] %v1408_v14  ;;  %v1291_v19 = vpop.f32.mrf.mxu2 }
 0x2ab   : > { %v1380_v18 = vpop.f32.mrf.mxu3 }
 0x2ac   : > { %v1381_v21 = vadd.f32 %v1380_v18, %v1291_v19  ;;  %v1253_v22 = vpop.f32.mrf.mxu0 }
 0x2ad   : > { %v1342_v8 = vpop.f32.mrf.mxu1 }
 0x2ae   : > { %v1424_v24 = vadd.f32 %v1381_v21, %v922_v23  ;;  %v1343_v25 = vadd.f32 %v1342_v8, %v1253_v22  ;;  %v913_v23 = vld [vmem:[#allocation3 + $0x78] sm:$0xff] }
 0x2b0   : > { %1456 = vst [vmem:[#allocation3 + $0xa8] sm:$0xff] %v1424_v24  ;;  %v1409_v17 = vadd.f32 %v1343_v25, %v907_v16  ;;  %v929_v24 = vld [vmem:[#allocation3 + $0x98] sm:$0xff] }
 0x2b2   : > { %1441 = vst [vmem:[#allocation3 + $0x88] sm:$0xff] %v1409_v17  ;;  %v1293_v13 = vpop.f32.mrf.mxu2 }
 0x2b3   : > { %v1382_v26 = vpop.f32.mrf.mxu3 }
 0x2b4   : > { %v1383_v12 = vadd.f32 %v1382_v26, %v1293_v13  ;;  %v1256_v27 = vpop.f32.mrf.mxu0 }
 0x2b5   : > { %v1345_v28 = vpop.f32.mrf.mxu1 }
 0x2b6   : > { %v1425_v29 = vadd.f32 %v1383_v12, %v923_v20  ;;  %v1346_v30 = vadd.f32 %v1345_v28, %v1256_v27 }
 0x2b8   : > { %1457 = vst [vmem:[#allocation3 + $0xd0] sm:$0xff] %v1425_v29  ;;  %v1410_v31 = vadd.f32 %v1346_v30, %v908_v0 }
 0x2ba   : > { %1442 = vst [vmem:[#allocation3 + $0xe8] sm:$0xff] %v1410_v31  ;;  %v1296_v32 = vpop.f32.mrf.mxu2 }
 0x2bb   : > { %v1385_v34 = vpop.f32.mrf.mxu3 }
 0x2bc   : > { %v1386_v35 = vadd.f32 %v1385_v34, %v1296_v32  ;;  %v1258_v1 = vpop.f32.mrf.mxu0 }
 0x2bd   : > { %v1347_v37 = vpop.f32.mrf.mxu1 }
 0x2be   : > { %v1426_v38 = vadd.f32 %v1386_v35, %v924_v33  ;;  %v1348_v39 = vadd.f32 %v1347_v37, %v1258_v1 }
 0x2c0   : > { %1458 = vst [vmem:[#allocation3 + $0x10] sm:$0xff] %v1426_v38  ;;  %v1411_v40 = vadd.f32 %v1348_v39, %v909_v36 }
 0x2c2   : > { %1443 = vst [vmem:[#allocation3 + $0xb8] sm:$0xff] %v1411_v40  ;;  %v1298_v41 = vpop.f32.mrf.mxu2 }
 0x2c3   : > { %v1387_v43 = vpop.f32.mrf.mxu3 }
 0x2c4   : > { %v1388_v45 = vadd.f32 %v1387_v43, %v1298_v41  ;;  %v1261_v46 = vpop.f32.mrf.mxu0 }
 0x2c5   : > { %v1350_v50 = vpop.f32.mrf.mxu1 }
 0x2c6   : > { %v1427_v51 = vadd.f32 %v1388_v45, %v925_v42  ;;  %v1351_v53 = vadd.f32 %v1350_v50, %v1261_v46 }
 0x2c8   : > { %1459 = vst [vmem:[#allocation3 + $0x28] sm:$0xff] %v1427_v51  ;;  %v1412_v54 = vadd.f32 %v1351_v53, %v910_v47 }
 0x2ca   : > { %1444 = vst [vmem:[#allocation3 + $0x60] sm:$0xff] %v1412_v54  ;;  %v1301_v55 = vpop.f32.mrf.mxu2 }
 0x2cb   : > { %v1390_v57 = vpop.f32.mrf.mxu3 }
 0x2cc   : > { %v1391_v60 = vadd.f32 %v1390_v57, %v1301_v55  ;;  %v1263_v61 = vpop.f32.mrf.mxu0 }
 0x2cd   : > { %v1352_v62 = vpop.f32.mrf.mxu1 }
 0x2ce   : > { %v1428_v63 = vadd.f32 %v1391_v60, %v926_v56  ;;  %v1353_v52 = vadd.f32 %v1352_v62, %v1263_v61 }
 0x2d0   : > { %1460 = vst [vmem:[#allocation3 + $0xa0] sm:$0xff] %v1428_v63  ;;  %v1413_v44 = vadd.f32 %v1353_v52, %v911_v59 }
 0x2d2   : > { %1445 = vst [vmem:[#allocation3 + $0xf0] sm:$0xff] %v1413_v44  ;;  %v1303_v5 = vpop.f32.mrf.mxu2 }
 0x2d3   : > { %v1392_v58 = vpop.f32.mrf.mxu3 }
 0x2d4   : > { %v1393_v4 = vadd.f32 %v1392_v58, %v1303_v5  ;;  %v1266_v3 = vpop.f32.mrf.mxu0 }
 0x2d5   : > { %v1355_v49 = vpop.f32.mrf.mxu1 }
 0x2d6   : > { %v1429_v2 = vadd.f32 %v1393_v4, %v927_v9  ;;  %v1356_v6 = vadd.f32 %v1355_v49, %v1266_v3 }
 0x2d8   : > { %1461 = vst [vmem:[#allocation3 + $0xf8] sm:$0xff] %v1429_v2  ;;  %v1414_v48 = vadd.f32 %v1356_v6, %v912_v7 }
 0x2da   : > { %1446 = vst [vmem:[#allocation3 + $0x8] sm:$0xff] %v1414_v48  ;;  %v1306_v11 = vpop.f32.mrf.mxu2 }
 0x2db   : > { %v1395_v10 = vpop.f32.mrf.mxu3 }
 0x2dc   : > { %v1396_v14 = vadd.f32 %v1395_v10, %v1306_v11  ;;  %v1268_v19 = vpop.f32.mrf.mxu0 }
 0x2dd   : > { %v1357_v18 = vpop.f32.mrf.mxu1 }
 0x2de   : > { %v1430_v21 = vadd.f32 %v1396_v14, %v928_v15  ;;  %v1358_v22 = vadd.f32 %v1357_v18, %v1268_v19 }
 0x2e0   : > { %1462 = vst [vmem:[#allocation3 + $0x20] sm:$0xff] %v1430_v21  ;;  %v1415_v16 = vadd.f32 %v1358_v22, %v913_v23 }
 0x2e2   : > { %1447 = vst [vmem:[#allocation3 + $0x78] sm:$0xff] %v1415_v16  ;;  %v1308_v8 = vpop.f32.mrf.mxu2 }
 0x2e3   : > { %v1397_v25 = vpop.f32.mrf.mxu3 }
 0x2e4   : > { %v1398_v17 = vadd.f32 %v1397_v25, %v1308_v8 }
 0x2e6   : > { %v1431_v13 = vadd.f32 %v1398_v17, %v929_v24 }
 0x2e8   : > { %1463 = vst [vmem:[#allocation3 + $0x98] sm:$0xff] %v1431_v13 }
 0x2e9 PF: > { %v3396_v20 = vld [vmem:[#allocation3 + $0xb0] sm:$0xff]  ;;  %v3398_v26 = vld [vmem:[#allocation3] sm:$0xff]  ;;  %v3400_v12 = vld [vmem:[#allocation3 + $0xd8] sm:$0xff]  ;;  %s1531_s29 = sand.u32 1, %s2669_s15  ;;  %s2151_s3 = sshll.u32 %s2673_s16, 5 }
 0x2ea   : > { %1499 = vst [vmem:[%s3245_s30] sm:$0xff] %v3396_v20  ;;  %v3404_v27 = vld [vmem:[#allocation3 + $0x18] sm:$0xff]  ;;  %v3408_v0 = vld [vmem:[#allocation3 + $0x50] sm:$0xff]  ;;  %v3412_v28 = vld [vmem:[#allocation3 + $0x68] sm:$0xff]  ;;  %s2148_s4 = sshll.u32 %s1531_s29, 8  ;;  %v2256_v60 = vpack.c.bf16 %v3398_v26, %v3396_v20  ;;  %s2152_s5 = sshll.u32 %s2669_s15, 7 }
 0x2eb   : > { %1500 = vst [vmem:[%s3245_s30 + $0x8] sm:$0xff] %v3398_v26  ;;  %v3416_v29 = vld [vmem:[#allocation3 + $0x30] sm:$0xff]  ;;  %v3420_v30 = vld [vmem:[#allocation3 + $0x48] sm:$0xff]  ;;  %v3424_v31 = vld [vmem:[#allocation3 + $0x80] sm:$0xff]  ;;  %s1566_s12 = sshra.s32 %s2148_s4, 3  ;;  %v2261_v61 = vpack.c.bf16 %v3404_v27, %v3400_v12  ;;  %v2266_v59 = vpack.c.bf16 %v3412_v28, %v3408_v0  ;;  %s1616_s15 = sadd.s32 %s2152_s5, %s2151_s3 }
 0x2ec   : > { %1501 = vst [vmem:[%s3245_s30 + $0x10] sm:$0xff] %v3400_v12  ;;  %v3428_v32 = vld [vmem:[#allocation3 + $0x88] sm:$0xff]  ;;  %v3436_v34 = vld [vmem:[#allocation3 + $0xb8] sm:$0xff]  ;;  %v3440_v35 = vld [vmem:[#allocation3 + $0x60] sm:$0xff]  ;;  %s2149_s0 = sshll.u32 %s1566_s12, 2  ;;  %v2271_v62 = vpack.c.bf16 %v3420_v30, %v3416_v29  ;;  %s2153_s16 = sshll.u32 %s1616_s15, 3 }
 0x2ed   : > { %1502 = vst [vmem:[%s3245_s30 + $0x18] sm:$0xff] %v3404_v27  ;;  %v3432_v33 = vld [vmem:[#allocation3 + $0xe8] sm:$0xff]  ;;  %v3444_v1 = vld [vmem:[#allocation3 + $0xf0] sm:$0xff]  ;;  %v3452_v37 = vld [vmem:[#allocation3 + $0x78] sm:$0xff]  ;;  %s3490_s26 = scalar_lea.vmem [#allocation2], %s2149_s0  ;;  %v2276_v63 = vpack.c.bf16 %v3428_v32, %v3424_v31  ;;  %s1618_s8 = scalar_lea.hbm %s3572_s2, %s2153_s16 }
 0x2ee   : > { %1503 = vst [vmem:[%s3245_s30 + $0x20] sm:$0xff] %v3408_v0  ;;  %v3448_v36 = vld [vmem:[#allocation3 + $0x8] sm:$0xff]  ;;  %v3456_v38 = vld [vmem:[#allocation3 + $0x38] sm:$0xff]  ;;  %v1485_v40 = vld [vmem:[#allocation3 + $0x40] sm:$0xff]  ;;  %v2281_v52 = vpack.c.bf16 %v3436_v34, %v3432_v33  ;;  %v2286_v44 = vpack.c.bf16 %v3444_v1, %v3440_v35  ;;  %s1619_s25 = sshll.u32 %s3245_s30, 4  ;;  %s1621_s7 = sshll.u32 %s1618_s8, 4  ;;  %s1620_s25 = int_to_ptr.vmem [resolvable:$true] %s1619_s25  ;;  %s1622_s7 = int_to_ptr.hbm [resolvable:$true] %s1621_s7 }
 0x2ef   : > { %1504 = vst [vmem:[%s3245_s30 + $0x28] sm:$0xff] %v3412_v28  ;;  %v1484_v39 = vld [vmem:[#allocation3 + $0x58] sm:$0xff]  ;;  %v1486_v41 = vld [vmem:[#allocation3 + $0xc8] sm:$0xff]  ;;  %v1487_v42 = vld [vmem:[#allocation3 + $0xe0] sm:$0xff]  ;;  %v2291_v5 = vpack.c.bf16 %v3452_v37, %v3448_v36  ;;  %s1603_s20 = scalar_lea.sflag [#allocation6], %s239_s17  ;;  %s2573_s21 = sshra.s32 %s1622_s7, 4  ;;  %s2574_s21 = int_to_ptr.hbm [resolvable:$true] %s2573_s21 }
 0x2f0   : > { %1505 = vst [vmem:[%s3245_s30 + $0x30] sm:$0xff] %v3416_v29  ;;  %v1488_v43 = vld [vmem:[#allocation3 + $0x90] sm:$0xff]  ;;  %v1490_v46 = vld [vmem:[#allocation3 + $0xc0] sm:$0xff]  ;;  %v1491_v47 = vld [vmem:[#allocation3 + $0xa8] sm:$0xff]  ;;  %v2296_v9 = vpack.c.bf16 %v1484_v39, %v3456_v38  ;;  %v2301_v58 = vpack.c.bf16 %v1486_v41, %v1485_v40  ;;  %s2575_s29 = scalar_lea.hbm %s2574_s21, 256  ;;  %s2579_s12 = scalar_lea.hbm %s3572_s2, 3072 }
 0x2f1   : > { %1506 = vst [vmem:[%s3245_s30 + $0x38] sm:$0xff] %v3420_v30  ;;  %v1489_v45 = vld [vmem:[#allocation3 + $0x70] sm:$0xff]  ;;  %v1494_v53 = vld [vmem:[#allocation3 + $0x28] sm:$0xff]  ;;  %v1495_v54 = vld [vmem:[#allocation3 + $0xa0] sm:$0xff]  ;;  %v2306_v4 = vpack.c.bf16 %v1488_v43, %v1487_v42  ;;  %p2576_p9 = scmp.ne.s32.totalorder %s2574_s21, %s2575_s29  ;;  %p2580_p13 = scmp.lt.s32.totalorder %s2574_s21, %s3572_s2 }
 0x2f2   : > { %1507 = vst [vmem:[%s3245_s30 + $0x40] sm:$0xff] %v3424_v31  ;;  %v1492_v50 = vld [vmem:[#allocation3 + $0xd0] sm:$0xff]  ;;  %v1496_v55 = vld [vmem:[#allocation3 + $0xf8] sm:$0xff]  ;;  %v1497_v56 = vld [vmem:[#allocation3 + $0x20] sm:$0xff]  ;;  %v2311_v3 = vpack.c.bf16 %v1490_v46, %v1489_v45  ;;  %p2581_p0 = scmp.lt.s32.totalorder %s2579_s12, %s2575_s29 }
 0x2f3   : > { %1508 = vst [vmem:[%s3245_s30 + $0x48] sm:$0xff] %v3428_v32  ;;  %v1493_v51 = vld [vmem:[#allocation3 + $0x10] sm:$0xff]  ;;  %v1498_v57 = vld [vmem:[#allocation3 + $0x98] sm:$0xff]  ;;  %v2316_v7 = vpack.c.bf16 %v1492_v50, %v1491_v47  ;;  %v2326_v2 = vpack.c.bf16 %v1496_v55, %v1495_v54  ;;  %p2577_p10 = pnand %p2576_p9, %p2819_p6 }
 0x2f4   : > { %1509 = vst [vmem:[%s3245_s30 + $0x50] sm:$0xff] %v3432_v33  ;;  %v2321_v49 = vpack.c.bf16 %v1494_v53, %v1493_v51  ;;  %v2331_v6 = vpack.c.bf16 %v1498_v57, %v1497_v56  ;;  %p2582_p2 = por %p2581_p0, %p2580_p13 }
 0x2f5   : > { %1510 = vst [vmem:[%s3245_s30 + $0x58] sm:$0xff] %v3436_v34  ;;  %p2578_p12 = pneg %p2577_p10 }
 0x2f6   : > { %1511 = vst [vmem:[%s3245_s30 + $0x60] sm:$0xff] %v3440_v35 }
 0x2f7   : > { %1512 = vst [vmem:[%s3245_s30 + $0x68] sm:$0xff] %v3444_v1  ;;  %p2583_p3 = pnand %p2582_p2, %p2578_p12 }
 0x2f8   : > { %1513 = vst [vmem:[%s3245_s30 + $0x70] sm:$0xff] %v3448_v36 }
 0x2f9   : > { %1514 = vst [vmem:[%s3245_s30 + $0x78] sm:$0xff] %v3452_v37 }
 0x2fa   : > { %1515 = vst [vmem:[%s3245_s30 + $0x80] sm:$0xff] %v3456_v38 }
 0x2fb   : > { %1516 = vst [vmem:[%s3245_s30 + $0x88] sm:$0xff] %v1484_v39 }
 0x2fc   : > { %1517 = vst [vmem:[%s3245_s30 + $0x90] sm:$0xff] %v1485_v40 }
 0x2fd   : > { %1518 = vst [vmem:[%s3245_s30 + $0x98] sm:$0xff] %v1486_v41 }
 0x2fe   : > { %1519 = vst [vmem:[%s3245_s30 + $0xa0] sm:$0xff] %v1487_v42 }
 0x2ff   : > { %1520 = vst [vmem:[%s3245_s30 + $0xa8] sm:$0xff] %v1488_v43 }
 0x300   : > { %1521 = vst [vmem:[%s3245_s30 + $0xb0] sm:$0xff] %v1489_v45 }
 0x301   : > { %1522 = vst [vmem:[%s3245_s30 + $0xb8] sm:$0xff] %v1490_v46 }
 0x302   : > { %1523 = vst [vmem:[%s3245_s30 + $0xc0] sm:$0xff] %v1491_v47 }
 0x303   : > { %1524 = vst [vmem:[%s3245_s30 + $0xc8] sm:$0xff] %v1492_v50 }
 0x304   : > { %1525 = vst [vmem:[%s3245_s30 + $0xd0] sm:$0xff] %v1493_v51 }
 0x305   : > { %1526 = vst [vmem:[%s3245_s30 + $0xd8] sm:$0xff] %v1494_v53 }
 0x306   : > { %1527 = vst [vmem:[%s3245_s30 + $0xe0] sm:$0xff] %v1495_v54 }
 0x307   : > { %1528 = vst [vmem:[%s3245_s30 + $0xe8] sm:$0xff] %v1496_v55 }
 0x308   : > { %1529 = vst [vmem:[%s3245_s30 + $0xf0] sm:$0xff] %v1497_v56 }
 0x309   : > { %1530 = vst [vmem:[%s3245_s30 + $0xf8] sm:$0xff] %v1498_v57 }
 0x30a   : > { %2257 = vst [vmem:[%s3490_s26] sm:$0xff] %v2256_v60  }
 0x30b   : > { %2333 = vst [vmem:[%s3490_s26 + $0x8] sm:$0xff] %v2261_v61  }
 0x30c   : > { %2334 = vst [vmem:[%s3490_s26 + $0x10] sm:$0xff] %v2266_v59  }
 0x30d   : > { %2335 = vst [vmem:[%s3490_s26 + $0x18] sm:$0xff] %v2271_v62  }
 0x30e   : > { %2336 = vst [vmem:[%s3490_s26 + $0x20] sm:$0xff] %v2276_v63  }
 0x30f   : > { %2337 = vst [vmem:[%s3490_s26 + $0x28] sm:$0xff] %v2281_v52  }
 0x310   : > { %2338 = vst [vmem:[%s3490_s26 + $0x30] sm:$0xff] %v2286_v44  }
 0x311   : > { %2339 = vst [vmem:[%s3490_s26 + $0x38] sm:$0xff] %v2291_v5  }
 0x312   : > { %2340 = vst [vmem:[%s3490_s26 + $0x40] sm:$0xff] %v2296_v9  }
 0x313   : > { %2341 = vst [vmem:[%s3490_s26 + $0x48] sm:$0xff] %v2301_v58  }
 0x314   : > { %2342 = vst [vmem:[%s3490_s26 + $0x50] sm:$0xff] %v2306_v4  }
 0x315   : > { %2343 = vst [vmem:[%s3490_s26 + $0x58] sm:$0xff] %v2311_v3  }
 0x316   : > { %2344 = vst [vmem:[%s3490_s26 + $0x60] sm:$0xff] %v2316_v7  }
 0x317   : > { %2345 = vst [vmem:[%s3490_s26 + $0x68] sm:$0xff] %v2321_v49  }
 0x318   : > { %2346 = vst [vmem:[%s3490_s26 + $0x70] sm:$0xff] %v2326_v2  }
 0x319   : > { %2347 = vst [vmem:[%s3490_s26 + $0x78] sm:$0xff] %v2331_v6  }
 0x31a   : > { %2586 = shalt.err (!%p2583_p3)
}
 0x31b   : > { %s2693_s17 = smov 128   ;;  %s2694_s5 = smov 8  }
 0x31c   : > { %2386 = dma.vmem_to_hbm [thread:$0]  (%p2819_p6), %s1620_s25, 4096, %s1622_s7, %s1603_s20, %s2693_s17, %s2693_s17, %s2694_s5  }
 0x31d PF: > { %p2402_p4 = scmp.ge.s32.totalorder %s2685_s19, 2  ;;  %s1636_s26 = sand.u32 1, %s2645_s9  }
 0x31e   : > { %s1637_s15 = scalar_lea.sflag [#allocation6], %s1636_s26 }
 0x31f   : > { %p2396_p7 = pnand %p2402_p4, %p2830_p8 }
 0x321   : > { %p2397_p11 = pneg %p2396_p7 }
 0x323   : > { %2640 = dma.done.wait (%p2397_p11), %s1637_s15, 4096  }
 0x324   : > { %2642 = vsyncadd (%p2397_p11), %s1637_s15, 4294963200  ;;  %s21_s19 = sadd.s32 1, %s2685_s19   ;;  %s3733_s15 = sld [smem:[#allocation13_spill]] }
 0x325   : > { %p18_p1 = scmp.ge.s32.totalorder %s21_s19, 14   ;;  %s3734_s17 = sld [smem:[#allocation14_spill]] }
 0x326   : > { %s3735_s22 = sld [smem:[#allocation15_spill]]  ;;  %s3736_s9 = smov %s2649_s10 }
 0x327   : > { %s3737_s10 = smov %s2653_s11  ;;  %s3738_s11 = smov %s2827_s24 }
 0x328   : > { %s3739_s12 = smov %s2661_s13  ;;  %s3740_s13 = smov %s2665_s14 }
 0x329   : > { %s3741_s14 = smov %s2824_s23  ;;  %s3742_s16 = smov %s2681_s18 }
 0x32a   :  { %20 = sbr.rel (!%p18_p1) target bundleno = 13 (0xd), region = 105 }
 0x32c   : > { %s3743_s18 = smov %s3735_s22 }
 0x32f   :  { %1643 = vsyncpa [#allocation5], 1 }
 0x330   :  { %1645 = vsyncpa [#allocation5 + $0x1], 1 }
 0x331   :  { %1646 = vsyncpa [#allocation8], 1 }
 0x332   :  { %1648 = vsyncpa [#allocation8 + $0x1], 1 }
 0x333   :  { %1649 = vsyncpa [#allocation6], 1 }
 0x334   :  { %1651 = vsyncpa [#allocation6 + $0x1], 1 }

</bundles_post_ra>
